<compile_context>
chip_gen: v7x
topology: tpu7x:2x2x1
jax: 0.10.0
libtpu: 0.0.40
codegen_flags: <defaults>
</compile_context>

<pallas_src>
import jax
import jax.numpy as jnp
import numpy as np
from jax.experimental import pallas as pl
from jax.experimental.pallas import tpu as pltpu  # noqa: F401


# ----------------------------------------------------------------------------
# Fused Pallas kernel: L stacked LSTM layers over S steps + final Linear.
# ----------------------------------------------------------------------------
def make_fused_lstm_fc_kernel(num_layers: int, seq_len: int, hidden: int,
                              batch: int):
    H = hidden
    B = batch
    S = seq_len

    def kernel(x_ref, wih0_ref, whh0_ref, b0_ref, *refs):
        # refs = [wstack_l, b_l] for layers 1..L-1, then wfc, bfc, out_ref
        n_rest = num_layers - 1
        rest = refs[: 2 * n_rest]
        wfc_ref = refs[2 * n_rest]
        bfc_ref = refs[2 * n_rest + 1]
        out_ref = refs[2 * n_rest + 2]

        # ---- hoisted layer-0 input projection: ONE matmul for all S steps ----
        # x_ref is time-major (S*B, E); bias b0 = b_ih0 + b_hh0 folded in here.
        gx0 = (jnp.dot(x_ref[...], wih0_ref[...],
                       preferred_element_type=jnp.float32)
               + b0_ref[...])                                   # (S*B, 4H)

        # ---- hoist weight loads / bias broadcasts out of the unrolled loop ----
        whh0 = whh0_ref[...]                                    # (H, 4H)
        wstack = [rest[2 * i][...] for i in range(n_rest)]      # (2H, 4H)
        b_b = [jnp.broadcast_to(rest[2 * i + 1][...], (B, 4 * H))
               for i in range(n_rest)]                          # hoisted bcast

        h = [jnp.zeros((B, H), jnp.float32) for _ in range(num_layers)]
        c = [jnp.zeros((B, H), jnp.float32) for _ in range(num_layers)]

        def cell(gates, c_prev):
            # One full-vreg EUP tanh for i/f/o (tanh-form sigmoid), one tanh
            # for the g block, one tanh for the new cell state.
            sig = 0.5 * jnp.tanh(0.5 * gates) + 0.5             # (B, 4H)
            i_g = sig[:, 0 * H:1 * H]
            f_g = sig[:, 1 * H:2 * H]
            o_g = sig[:, 3 * H:4 * H]
            g_g = jnp.tanh(gates[:, 2 * H:3 * H])
            c_new = f_g * c_prev + i_g * g_g
            h_new = o_g * jnp.tanh(c_new)
            return h_new, c_new

        for t in range(S):                       # static, fully unrolled (S=8)
            # Layer 0: only the recurrent matmul sits on the serial chain;
            # the input contribution comes from the hoisted gx0 slab.
            gates0 = gx0[t * B:(t + 1) * B, :] + jnp.dot(
                h[0], whh0, preferred_element_type=jnp.float32)
            h[0], c[0] = cell(gates0, c[0])

            # Layers >= 1: single fused (B, 2H) x (2H, 4H) gate matmul per cell.
            for l in range(1, num_layers):
                inp = jnp.concatenate([h[l - 1], h[l]], axis=-1)   # (B, 2H)
                gates = (jnp.dot(inp, wstack[l - 1],
                                 preferred_element_type=jnp.float32)
                         + b_b[l - 1])
                h[l], c[l] = cell(gates, c[l])

        # Final Linear on the last hidden state of the top layer.
        out = (jnp.dot(h[-1], wfc_ref[...], preferred_element_type=jnp.float32)
               + bfc_ref[...])
        out_ref[...] = out.astype(out_ref.dtype)

    return kernel


# ----------------------------------------------------------------------------
# Wrapper: one pallas_call for the whole model.
# ----------------------------------------------------------------------------
def lstm_fc_forward(x_enc, params, *, hidden, num_layers):
    """x_enc: (B, S, E) batch-first -> (B, pred_len*c_out)."""
    B0, S, E = x_enc.shape
    Bp = max(8, -(-B0 // 8) * 8)          # pad batch to a full sublane tile

    wih0_t, whh0_t, b0 = params["l0"]
    rest = params["rest"]
    wfc_t, bfc = params["fc_w_t"], params["fc_b"]
    O = wfc_t.shape[-1]

    x = x_enc.astype(jnp.float32)
    if Bp != B0:
        x = jnp.pad(x, ((0, Bp - B0), (0, 0), (0, 0)))
    # (B, S, E) -> (S, B, E) -> (S*B, E): per-step slices become leading-dim
    # (sublane) slices and the layer-0 projection is one big matmul in-kernel.
    x_flat = jnp.transpose(x, (1, 0, 2)).reshape(S * Bp, E)

    args = [x_flat, wih0_t, whh0_t, b0]
    in_specs = [
        pl.BlockSpec((S * Bp, E), lambda: (0, 0)),
        pl.BlockSpec(wih0_t.shape, lambda: (0, 0)),
        pl.BlockSpec(whh0_t.shape, lambda: (0, 0)),
        pl.BlockSpec(b0.shape, lambda: (0, 0)),
    ]
    for (wstack, b) in rest:
        args += [wstack, b]
        in_specs += [pl.BlockSpec(wstack.shape, lambda: (0, 0)),
                     pl.BlockSpec(b.shape, lambda: (0, 0))]
    args += [wfc_t, bfc]
    in_specs += [pl.BlockSpec(wfc_t.shape, lambda: (0, 0)),
                 pl.BlockSpec(bfc.shape, lambda: (0, 0))]

    kernel = make_fused_lstm_fc_kernel(num_layers, S, hidden, Bp)
    out = pl.pallas_call(
        kernel,
        out_shape=jax.ShapeDtypeStruct((Bp, O), jnp.float32),
        in_specs=in_specs,
        out_specs=pl.BlockSpec((Bp, O), lambda: (0, 0)),
    )(*args)
    # TODO(synk): on v7x, split a larger batch across the 2 TensorCores via a
    # grid axis with dimension_semantics=("parallel",); at one sublane tile it
    # is not profitable.
    return out[:B0]


# ----------------------------------------------------------------------------
# Model config + parameter init (mirrors PyTorch nn.LSTM / nn.Linear shapes).
# ----------------------------------------------------------------------------
class Configs:
    task_name = "long_term_forecast"
    seq_len = 8
    pred_len = 4
    enc_in = 4      # input_dim
    d_model = 32    # hidden_dim
    e_layers = 2    # num_layers
    c_out = 4       # output_dim


def init_params(key, cfg):
    """uniform(-1/sqrt(H), 1/sqrt(H)) init; PyTorch gate order (i, f, g, o)."""
    H, E, L = cfg.d_model, cfg.enc_in, cfg.e_layers
    O = cfg.c_out * cfg.pred_len
    k = 1.0 / np.sqrt(H)
    layers_raw = []
    l0_packed = None
    rest_packed = []
    for layer in range(L):
        in_dim = E if layer == 0 else H
        key, k1, k2, k3, k4 = jax.random.split(key, 5)
        w_ih = jax.random.uniform(k1, (4 * H, in_dim), jnp.float32, -k, k)
        w_hh = jax.random.uniform(k2, (4 * H, H), jnp.float32, -k, k)
        b_ih = jax.random.uniform(k3, (4 * H,), jnp.float32, -k, k)
        b_hh = jax.random.uniform(k4, (4 * H,), jnp.float32, -k, k)
        b = (b_ih + b_hh).reshape(1, 4 * H)
        if layer == 0:
            # layer 0: separate (E, 4H) / (H, 4H) because the input projection
            # is hoisted out of the time loop inside the kernel.
            l0_packed = (w_ih.T, w_hh.T, b)
        else:
            # layers >= 1: stacked [W_ih; W_hh] -> (2H, 4H) for the fused
            # single gate matmul per cell.
            rest_packed.append((jnp.concatenate([w_ih.T, w_hh.T], axis=0), b))
        layers_raw.append((w_ih, w_hh, b_ih, b_hh))
    key, k1, k2 = jax.random.split(key, 3)
    fc_w = jax.random.uniform(k1, (O, H), jnp.float32, -k, k)
    fc_b = jax.random.uniform(k2, (O,), jnp.float32, -k, k)
    return {
        "l0": l0_packed,
        "rest": rest_packed,
        "fc_w_t": fc_w.T,                  # (H, O)
        "fc_b": fc_b.reshape(1, O),        # (1, O)
        "layers_raw": layers_raw,
        "fc_raw": (fc_w, fc_b),
    }


def model_forward(params, cfg, x_enc, x_mark_enc=None, x_dec=None,
                  x_mark_dec=None, mask=None):
    if cfg.task_name not in ("long_term_forecast", "short_term_forecast"):
        return None
    out = lstm_fc_forward(x_enc, params, hidden=cfg.d_model,
                          num_layers=cfg.e_layers)    # (B, pred_len*c_out)
    B = out.shape[0]
    dec_out = out.reshape(B, -1, cfg.c_out)           # (B, pred_len, c_out)
    return dec_out[:, -cfg.pred_len:, :]


# ----------------------------------------------------------------------------
# Pure-JAX reference (correctness check against PyTorch semantics).
# ----------------------------------------------------------------------------
def reference_forward(params, cfg, x_enc):
    H = cfg.d_model
    x = x_enc.astype(jnp.float32)  # (B, S, E)
    B = x.shape[0]
    for (w_ih, w_hh, b_ih, b_hh) in params["layers_raw"]:
        def step(carry, xt):
            h, c = carry
            gates = xt @ w_ih.T + b_ih + h @ w_hh.T + b_hh
            i, f, g, o = jnp.split(gates, 4, axis=-1)
            i, f, o = jax.nn.sigmoid(i), jax.nn.sigmoid(f), jax.nn.sigmoid(o)
            g = jnp.tanh(g)
            c = f * c + i * g
            h = o * jnp.tanh(c)
            return (h, c), h
        h0 = jnp.zeros((B, H), jnp.float32)
        c0 = jnp.zeros((B, H), jnp.float32)
        _, hs = jax.lax.scan(step, (h0, c0), jnp.transpose(x, (1, 0, 2)))
        x = jnp.transpose(hs, (1, 0, 2))
    fc_w, fc_b = params["fc_raw"]
    out = x[:, -1, :] @ fc_w.T + fc_b
    return out.reshape(B, -1, cfg.c_out)[:, -cfg.pred_len:, :]


# ----------------------------------------------------------------------------
if __name__ == "__main__":
    cfg = Configs()
    key = jax.random.PRNGKey(0)
    key, kp, kx = jax.random.split(key, 3)
    params = init_params(kp, cfg)

    B = 2
    x_enc = jax.random.normal(kx, (B, cfg.seq_len, cfg.enc_in), jnp.float32)
    x_mark_enc = jnp.zeros((B, cfg.seq_len, 1), jnp.float32)   # unused by forward
    x_dec = jnp.zeros((B, cfg.pred_len, cfg.enc_in), jnp.float32)
    x_mark_dec = jnp.zeros((B, cfg.pred_len, 1), jnp.float32)

    out = model_forward(params, cfg, x_enc, x_mark_enc, x_dec, x_mark_dec)
    out = jax.block_until_ready(out)

    ref = reference_forward(params, cfg, x_enc)
    assert out.shape == (B, cfg.pred_len, cfg.c_out), out.shape
    # tanh-form sigmoid differs from exp-based sigmoid at ~1e-6 per op; use a
    # slightly loosened tolerance as recommended by the review.
    assert np.allclose(np.asarray(out), np.asarray(ref), atol=1e-4, rtol=1e-4), (
        np.max(np.abs(np.asarray(out) - np.asarray(ref))))

    print("KERNEL_OK")
</pallas_src>

<mosaic_0001>
module attributes {stable_mosaic.version = 11 : i64} {
  func.func @kernel(%arg0: memref<64x4xf32, #tpu.memory_space<vmem>>, %arg1: memref<4x128xf32, #tpu.memory_space<vmem>>, %arg2: memref<32x128xf32, #tpu.memory_space<vmem>>, %arg3: memref<1x128xf32, #tpu.memory_space<vmem>>, %arg4: memref<64x128xf32, #tpu.memory_space<vmem>>, %arg5: memref<1x128xf32, #tpu.memory_space<vmem>>, %arg6: memref<32x16xf32, #tpu.memory_space<vmem>>, %arg7: memref<1x16xf32, #tpu.memory_space<vmem>>, %arg8: memref<8x16xf32, #tpu.memory_space<vmem>>) attributes {dimension_semantics = [], scalar_prefetch = 0 : i64, scratch_operands = 0 : i64, tpu.core_type = #tpu.core_type<tc>} {
    %c0 = arith.constant 0 : index
    %c0_0 = arith.constant 0 : index
    %0 = vector.load %arg0[%c0, %c0_0] : memref<64x4xf32, #tpu.memory_space<vmem>>, vector<64x4xf32>
    %c0_1 = arith.constant 0 : index
    %c0_2 = arith.constant 0 : index
    %1 = vector.load %arg1[%c0_1, %c0_2] : memref<4x128xf32, #tpu.memory_space<vmem>>, vector<4x128xf32>
    %cst = arith.constant dense<0.000000e+00> : vector<64x128xf32>
    %2 = tpu.matmul %0, %1, %cst {dimension_numbers = #tpu.dot_dimension_numbers<[1], [0], [0], [1], [0, 0, 1, 1], [], []>} : vector<64x4xf32>, vector<4x128xf32>, vector<64x128xf32> -> vector<64x128xf32>
    %c0_3 = arith.constant 0 : index
    %c0_4 = arith.constant 0 : index
    %3 = vector.load %arg3[%c0_3, %c0_4] : memref<1x128xf32, #tpu.memory_space<vmem>>, vector<1x128xf32>
    %4 = vector.broadcast %3 : vector<1x128xf32> to vector<64x128xf32>
    %5 = arith.addf %2, %4 : vector<64x128xf32>
    %c0_5 = arith.constant 0 : index
    %c0_6 = arith.constant 0 : index
    %6 = vector.load %arg2[%c0_5, %c0_6] : memref<32x128xf32, #tpu.memory_space<vmem>>, vector<32x128xf32>
    %c0_7 = arith.constant 0 : index
    %c0_8 = arith.constant 0 : index
    %7 = vector.load %arg4[%c0_7, %c0_8] : memref<64x128xf32, #tpu.memory_space<vmem>>, vector<64x128xf32>
    %c0_9 = arith.constant 0 : index
    %c0_10 = arith.constant 0 : index
    %8 = vector.load %arg5[%c0_9, %c0_10] : memref<1x128xf32, #tpu.memory_space<vmem>>, vector<1x128xf32>
    %9 = vector.shape_cast %8 : vector<1x128xf32> to vector<1x128xf32>
    %10 = vector.broadcast %9 : vector<1x128xf32> to vector<8x128xf32>
    %cst_11 = arith.constant 0.000000e+00 : f32
    %11 = vector.broadcast %cst_11 : f32 to vector<8x32xf32>
    %cst_12 = arith.constant 0.000000e+00 : f32
    %12 = vector.broadcast %cst_12 : f32 to vector<8x32xf32>
    %cst_13 = arith.constant 0.000000e+00 : f32
    %13 = vector.broadcast %cst_13 : f32 to vector<8x32xf32>
    %cst_14 = arith.constant 0.000000e+00 : f32
    %14 = vector.broadcast %cst_14 : f32 to vector<8x32xf32>
    %15 = vector.extract_strided_slice %5 {offsets = [0, 0], sizes = [8, 128], strides = [1, 1]} : vector<64x128xf32> to vector<8x128xf32>
    %cst_15 = arith.constant dense<0.000000e+00> : vector<8x128xf32>
    %16 = tpu.matmul %11, %6, %cst_15 {dimension_numbers = #tpu.dot_dimension_numbers<[1], [0], [0], [1], [0, 0, 1, 1], [], []>} : vector<8x32xf32>, vector<32x128xf32>, vector<8x128xf32> -> vector<8x128xf32>
    %17 = arith.addf %15, %16 : vector<8x128xf32>
    %cst_16 = arith.constant 5.000000e-01 : f32
    %18 = vector.broadcast %cst_16 : f32 to vector<8x128xf32>
    %19 = arith.mulf %18, %17 : vector<8x128xf32>
    %20 = math.tanh %19 : vector<8x128xf32>
    %cst_17 = arith.constant 5.000000e-01 : f32
    %21 = vector.broadcast %cst_17 : f32 to vector<8x128xf32>
    %22 = arith.mulf %21, %20 : vector<8x128xf32>
    %cst_18 = arith.constant 5.000000e-01 : f32
    %23 = vector.broadcast %cst_18 : f32 to vector<8x128xf32>
    %24 = arith.addf %22, %23 : vector<8x128xf32>
    %25 = vector.extract_strided_slice %24 {offsets = [0, 0], sizes = [8, 32], strides = [1, 1]} : vector<8x128xf32> to vector<8x32xf32>
    %26 = vector.extract_strided_slice %24 {offsets = [0, 32], sizes = [8, 32], strides = [1, 1]} : vector<8x128xf32> to vector<8x32xf32>
    %27 = vector.extract_strided_slice %24 {offsets = [0, 96], sizes = [8, 32], strides = [1, 1]} : vector<8x128xf32> to vector<8x32xf32>
    %28 = vector.extract_strided_slice %17 {offsets = [0, 64], sizes = [8, 32], strides = [1, 1]} : vector<8x128xf32> to vector<8x32xf32>
    %29 = math.tanh %28 : vector<8x32xf32>
    %30 = arith.mulf %26, %13 : vector<8x32xf32>
    %31 = arith.mulf %25, %29 : vector<8x32xf32>
    %32 = arith.addf %30, %31 : vector<8x32xf32>
    %33 = math.tanh %32 : vector<8x32xf32>
    %34 = arith.mulf %27, %33 : vector<8x32xf32>
    %35 = tpu.concatenate %34, %12 in 1 : vector<8x32xf32>, vector<8x32xf32> -> vector<8x64xf32>
    %cst_19 = arith.constant dense<0.000000e+00> : vector<8x128xf32>
    %36 = tpu.matmul %35, %7, %cst_19 {dimension_numbers = #tpu.dot_dimension_numbers<[1], [0], [0], [1], [0, 0, 1, 1], [], []>} : vector<8x64xf32>, vector<64x128xf32>, vector<8x128xf32> -> vector<8x128xf32>
    %37 = arith.addf %36, %10 : vector<8x128xf32>
    %cst_20 = arith.constant 5.000000e-01 : f32
    %38 = vector.broadcast %cst_20 : f32 to vector<8x128xf32>
    %39 = arith.mulf %38, %37 : vector<8x128xf32>
    %40 = math.tanh %39 : vector<8x128xf32>
    %cst_21 = arith.constant 5.000000e-01 : f32
    %41 = vector.broadcast %cst_21 : f32 to vector<8x128xf32>
    %42 = arith.mulf %41, %40 : vector<8x128xf32>
    %cst_22 = arith.constant 5.000000e-01 : f32
    %43 = vector.broadcast %cst_22 : f32 to vector<8x128xf32>
    %44 = arith.addf %42, %43 : vector<8x128xf32>
    %45 = vector.extract_strided_slice %44 {offsets = [0, 0], sizes = [8, 32], strides = [1, 1]} : vector<8x128xf32> to vector<8x32xf32>
    %46 = vector.extract_strided_slice %44 {offsets = [0, 32], sizes = [8, 32], strides = [1, 1]} : vector<8x128xf32> to vector<8x32xf32>
    %47 = vector.extract_strided_slice %44 {offsets = [0, 96], sizes = [8, 32], strides = [1, 1]} : vector<8x128xf32> to vector<8x32xf32>
    %48 = vector.extract_strided_slice %37 {offsets = [0, 64], sizes = [8, 32], strides = [1, 1]} : vector<8x128xf32> to vector<8x32xf32>
    %49 = math.tanh %48 : vector<8x32xf32>
    %50 = arith.mulf %46, %14 : vector<8x32xf32>
    %51 = arith.mulf %45, %49 : vector<8x32xf32>
    %52 = arith.addf %50, %51 : vector<8x32xf32>
    %53 = math.tanh %52 : vector<8x32xf32>
    %54 = arith.mulf %47, %53 : vector<8x32xf32>
    %55 = vector.extract_strided_slice %5 {offsets = [8, 0], sizes = [8, 128], strides = [1, 1]} : vector<64x128xf32> to vector<8x128xf32>
    %cst_23 = arith.constant dense<0.000000e+00> : vector<8x128xf32>
    %56 = tpu.matmul %34, %6, %cst_23 {dimension_numbers = #tpu.dot_dimension_numbers<[1], [0], [0], [1], [0, 0, 1, 1], [], []>} : vector<8x32xf32>, vector<32x128xf32>, vector<8x128xf32> -> vector<8x128xf32>
    %57 = arith.addf %55, %56 : vector<8x128xf32>
    %cst_24 = arith.constant 5.000000e-01 : f32
    %58 = vector.broadcast %cst_24 : f32 to vector<8x128xf32>
    %59 = arith.mulf %58, %57 : vector<8x128xf32>
    %60 = math.tanh %59 : vector<8x128xf32>
    %cst_25 = arith.constant 5.000000e-01 : f32
    %61 = vector.broadcast %cst_25 : f32 to vector<8x128xf32>
    %62 = arith.mulf %61, %60 : vector<8x128xf32>
    %cst_26 = arith.constant 5.000000e-01 : f32
    %63 = vector.broadcast %cst_26 : f32 to vector<8x128xf32>
    %64 = arith.addf %62, %63 : vector<8x128xf32>
    %65 = vector.extract_strided_slice %64 {offsets = [0, 0], sizes = [8, 32], strides = [1, 1]} : vector<8x128xf32> to vector<8x32xf32>
    %66 = vector.extract_strided_slice %64 {offsets = [0, 32], sizes = [8, 32], strides = [1, 1]} : vector<8x128xf32> to vector<8x32xf32>
    %67 = vector.extract_strided_slice %64 {offsets = [0, 96], sizes = [8, 32], strides = [1, 1]} : vector<8x128xf32> to vector<8x32xf32>
    %68 = vector.extract_strided_slice %57 {offsets = [0, 64], sizes = [8, 32], strides = [1, 1]} : vector<8x128xf32> to vector<8x32xf32>
    %69 = math.tanh %68 : vector<8x32xf32>
    %70 = arith.mulf %66, %32 : vector<8x32xf32>
    %71 = arith.mulf %65, %69 : vector<8x32xf32>
    %72 = arith.addf %70, %71 : vector<8x32xf32>
    %73 = math.tanh %72 : vector<8x32xf32>
    %74 = arith.mulf %67, %73 : vector<8x32xf32>
    %75 = tpu.concatenate %74, %54 in 1 : vector<8x32xf32>, vector<8x32xf32> -> vector<8x64xf32>
    %cst_27 = arith.constant dense<0.000000e+00> : vector<8x128xf32>
    %76 = tpu.matmul %75, %7, %cst_27 {dimension_numbers = #tpu.dot_dimension_numbers<[1], [0], [0], [1], [0, 0, 1, 1], [], []>} : vector<8x64xf32>, vector<64x128xf32>, vector<8x128xf32> -> vector<8x128xf32>
    %77 = arith.addf %76, %10 : vector<8x128xf32>
    %cst_28 = arith.constant 5.000000e-01 : f32
    %78 = vector.broadcast %cst_28 : f32 to vector<8x128xf32>
    %79 = arith.mulf %78, %77 : vector<8x128xf32>
    %80 = math.tanh %79 : vector<8x128xf32>
    %cst_29 = arith.constant 5.000000e-01 : f32
    %81 = vector.broadcast %cst_29 : f32 to vector<8x128xf32>
    %82 = arith.mulf %81, %80 : vector<8x128xf32>
    %cst_30 = arith.constant 5.000000e-01 : f32
    %83 = vector.broadcast %cst_30 : f32 to vector<8x128xf32>
    %84 = arith.addf %82, %83 : vector<8x128xf32>
    %85 = vector.extract_strided_slice %84 {offsets = [0, 0], sizes = [8, 32], strides = [1, 1]} : vector<8x128xf32> to vector<8x32xf32>
    %86 = vector.extract_strided_slice %84 {offsets = [0, 32], sizes = [8, 32], strides = [1, 1]} : vector<8x128xf32> to vector<8x32xf32>
    %87 = vector.extract_strided_slice %84 {offsets = [0, 96], sizes = [8, 32], strides = [1, 1]} : vector<8x128xf32> to vector<8x32xf32>
    %88 = vector.extract_strided_slice %77 {offsets = [0, 64], sizes = [8, 32], strides = [1, 1]} : vector<8x128xf32> to vector<8x32xf32>
    %89 = math.tanh %88 : vector<8x32xf32>
    %90 = arith.mulf %86, %52 : vector<8x32xf32>
    %91 = arith.mulf %85, %89 : vector<8x32xf32>
    %92 = arith.addf %90, %91 : vector<8x32xf32>
    %93 = math.tanh %92 : vector<8x32xf32>
    %94 = arith.mulf %87, %93 : vector<8x32xf32>
    %95 = vector.extract_strided_slice %5 {offsets = [16, 0], sizes = [8, 128], strides = [1, 1]} : vector<64x128xf32> to vector<8x128xf32>
    %cst_31 = arith.constant dense<0.000000e+00> : vector<8x128xf32>
    %96 = tpu.matmul %74, %6, %cst_31 {dimension_numbers = #tpu.dot_dimension_numbers<[1], [0], [0], [1], [0, 0, 1, 1], [], []>} : vector<8x32xf32>, vector<32x128xf32>, vector<8x128xf32> -> vector<8x128xf32>
    %97 = arith.addf %95, %96 : vector<8x128xf32>
    %cst_32 = arith.constant 5.000000e-01 : f32
    %98 = vector.broadcast %cst_32 : f32 to vector<8x128xf32>
    %99 = arith.mulf %98, %97 : vector<8x128xf32>
    %100 = math.tanh %99 : vector<8x128xf32>
    %cst_33 = arith.constant 5.000000e-01 : f32
    %101 = vector.broadcast %cst_33 : f32 to vector<8x128xf32>
    %102 = arith.mulf %101, %100 : vector<8x128xf32>
    %cst_34 = arith.constant 5.000000e-01 : f32
    %103 = vector.broadcast %cst_34 : f32 to vector<8x128xf32>
    %104 = arith.addf %102, %103 : vector<8x128xf32>
    %105 = vector.extract_strided_slice %104 {offsets = [0, 0], sizes = [8, 32], strides = [1, 1]} : vector<8x128xf32> to vector<8x32xf32>
    %106 = vector.extract_strided_slice %104 {offsets = [0, 32], sizes = [8, 32], strides = [1, 1]} : vector<8x128xf32> to vector<8x32xf32>
    %107 = vector.extract_strided_slice %104 {offsets = [0, 96], sizes = [8, 32], strides = [1, 1]} : vector<8x128xf32> to vector<8x32xf32>
    %108 = vector.extract_strided_slice %97 {offsets = [0, 64], sizes = [8, 32], strides = [1, 1]} : vector<8x128xf32> to vector<8x32xf32>
    %109 = math.tanh %108 : vector<8x32xf32>
    %110 = arith.mulf %106, %72 : vector<8x32xf32>
    %111 = arith.mulf %105, %109 : vector<8x32xf32>
    %112 = arith.addf %110, %111 : vector<8x32xf32>
    %113 = math.tanh %112 : vector<8x32xf32>
    %114 = arith.mulf %107, %113 : vector<8x32xf32>
    %115 = tpu.concatenate %114, %94 in 1 : vector<8x32xf32>, vector<8x32xf32> -> vector<8x64xf32>
    %cst_35 = arith.constant dense<0.000000e+00> : vector<8x128xf32>
    %116 = tpu.matmul %115, %7, %cst_35 {dimension_numbers = #tpu.dot_dimension_numbers<[1], [0], [0], [1], [0, 0, 1, 1], [], []>} : vector<8x64xf32>, vector<64x128xf32>, vector<8x128xf32> -> vector<8x128xf32>
    %117 = arith.addf %116, %10 : vector<8x128xf32>
    %cst_36 = arith.constant 5.000000e-01 : f32
    %118 = vector.broadcast %cst_36 : f32 to vector<8x128xf32>
    %119 = arith.mulf %118, %117 : vector<8x128xf32>
    %120 = math.tanh %119 : vector<8x128xf32>
    %cst_37 = arith.constant 5.000000e-01 : f32
    %121 = vector.broadcast %cst_37 : f32 to vector<8x128xf32>
    %122 = arith.mulf %121, %120 : vector<8x128xf32>
    %cst_38 = arith.constant 5.000000e-01 : f32
    %123 = vector.broadcast %cst_38 : f32 to vector<8x128xf32>
    %124 = arith.addf %122, %123 : vector<8x128xf32>
    %125 = vector.extract_strided_slice %124 {offsets = [0, 0], sizes = [8, 32], strides = [1, 1]} : vector<8x128xf32> to vector<8x32xf32>
    %126 = vector.extract_strided_slice %124 {offsets = [0, 32], sizes = [8, 32], strides = [1, 1]} : vector<8x128xf32> to vector<8x32xf32>
    %127 = vector.extract_strided_slice %124 {offsets = [0, 96], sizes = [8, 32], strides = [1, 1]} : vector<8x128xf32> to vector<8x32xf32>
    %128 = vector.extract_strided_slice %117 {offsets = [0, 64], sizes = [8, 32], strides = [1, 1]} : vector<8x128xf32> to vector<8x32xf32>
    %129 = math.tanh %128 : vector<8x32xf32>
    %130 = arith.mulf %126, %92 : vector<8x32xf32>
    %131 = arith.mulf %125, %129 : vector<8x32xf32>
    %132 = arith.addf %130, %131 : vector<8x32xf32>
    %133 = math.tanh %132 : vector<8x32xf32>
    %134 = arith.mulf %127, %133 : vector<8x32xf32>
    %135 = vector.extract_strided_slice %5 {offsets = [24, 0], sizes = [8, 128], strides = [1, 1]} : vector<64x128xf32> to vector<8x128xf32>
    %cst_39 = arith.constant dense<0.000000e+00> : vector<8x128xf32>
    %136 = tpu.matmul %114, %6, %cst_39 {dimension_numbers = #tpu.dot_dimension_numbers<[1], [0], [0], [1], [0, 0, 1, 1], [], []>} : vector<8x32xf32>, vector<32x128xf32>, vector<8x128xf32> -> vector<8x128xf32>
    %137 = arith.addf %135, %136 : vector<8x128xf32>
    %cst_40 = arith.constant 5.000000e-01 : f32
    %138 = vector.broadcast %cst_40 : f32 to vector<8x128xf32>
    %139 = arith.mulf %138, %137 : vector<8x128xf32>
    %140 = math.tanh %139 : vector<8x128xf32>
    %cst_41 = arith.constant 5.000000e-01 : f32
    %141 = vector.broadcast %cst_41 : f32 to vector<8x128xf32>
    %142 = arith.mulf %141, %140 : vector<8x128xf32>
    %cst_42 = arith.constant 5.000000e-01 : f32
    %143 = vector.broadcast %cst_42 : f32 to vector<8x128xf32>
    %144 = arith.addf %142, %143 : vector<8x128xf32>
    %145 = vector.extract_strided_slice %144 {offsets = [0, 0], sizes = [8, 32], strides = [1, 1]} : vector<8x128xf32> to vector<8x32xf32>
    %146 = vector.extract_strided_slice %144 {offsets = [0, 32], sizes = [8, 32], strides = [1, 1]} : vector<8x128xf32> to vector<8x32xf32>
    %147 = vector.extract_strided_slice %144 {offsets = [0, 96], sizes = [8, 32], strides = [1, 1]} : vector<8x128xf32> to vector<8x32xf32>
    %148 = vector.extract_strided_slice %137 {offsets = [0, 64], sizes = [8, 32], strides = [1, 1]} : vector<8x128xf32> to vector<8x32xf32>
    %149 = math.tanh %148 : vector<8x32xf32>
    %150 = arith.mulf %146, %112 : vector<8x32xf32>
    %151 = arith.mulf %145, %149 : vector<8x32xf32>
    %152 = arith.addf %150, %151 : vector<8x32xf32>
    %153 = math.tanh %152 : vector<8x32xf32>
    %154 = arith.mulf %147, %153 : vector<8x32xf32>
    %155 = tpu.concatenate %154, %134 in 1 : vector<8x32xf32>, vector<8x32xf32> -> vector<8x64xf32>
    %cst_43 = arith.constant dense<0.000000e+00> : vector<8x128xf32>
    %156 = tpu.matmul %155, %7, %cst_43 {dimension_numbers = #tpu.dot_dimension_numbers<[1], [0], [0], [1], [0, 0, 1, 1], [], []>} : vector<8x64xf32>, vector<64x128xf32>, vector<8x128xf32> -> vector<8x128xf32>
    %157 = arith.addf %156, %10 : vector<8x128xf32>
    %cst_44 = arith.constant 5.000000e-01 : f32
    %158 = vector.broadcast %cst_44 : f32 to vector<8x128xf32>
    %159 = arith.mulf %158, %157 : vector<8x128xf32>
    %160 = math.tanh %159 : vector<8x128xf32>
    %cst_45 = arith.constant 5.000000e-01 : f32
    %161 = vector.broadcast %cst_45 : f32 to vector<8x128xf32>
    %162 = arith.mulf %161, %160 : vector<8x128xf32>
    %cst_46 = arith.constant 5.000000e-01 : f32
    %163 = vector.broadcast %cst_46 : f32 to vector<8x128xf32>
    %164 = arith.addf %162, %163 : vector<8x128xf32>
    %165 = vector.extract_strided_slice %164 {offsets = [0, 0], sizes = [8, 32], strides = [1, 1]} : vector<8x128xf32> to vector<8x32xf32>
    %166 = vector.extract_strided_slice %164 {offsets = [0, 32], sizes = [8, 32], strides = [1, 1]} : vector<8x128xf32> to vector<8x32xf32>
    %167 = vector.extract_strided_slice %164 {offsets = [0, 96], sizes = [8, 32], strides = [1, 1]} : vector<8x128xf32> to vector<8x32xf32>
    %168 = vector.extract_strided_slice %157 {offsets = [0, 64], sizes = [8, 32], strides = [1, 1]} : vector<8x128xf32> to vector<8x32xf32>
    %169 = math.tanh %168 : vector<8x32xf32>
    %170 = arith.mulf %166, %132 : vector<8x32xf32>
    %171 = arith.mulf %165, %169 : vector<8x32xf32>
    %172 = arith.addf %170, %171 : vector<8x32xf32>
    %173 = math.tanh %172 : vector<8x32xf32>
    %174 = arith.mulf %167, %173 : vector<8x32xf32>
    %175 = vector.extract_strided_slice %5 {offsets = [32, 0], sizes = [8, 128], strides = [1, 1]} : vector<64x128xf32> to vector<8x128xf32>
    %cst_47 = arith.constant dense<0.000000e+00> : vector<8x128xf32>
    %176 = tpu.matmul %154, %6, %cst_47 {dimension_numbers = #tpu.dot_dimension_numbers<[1], [0], [0], [1], [0, 0, 1, 1], [], []>} : vector<8x32xf32>, vector<32x128xf32>, vector<8x128xf32> -> vector<8x128xf32>
    %177 = arith.addf %175, %176 : vector<8x128xf32>
    %cst_48 = arith.constant 5.000000e-01 : f32
    %178 = vector.broadcast %cst_48 : f32 to vector<8x128xf32>
    %179 = arith.mulf %178, %177 : vector<8x128xf32>
    %180 = math.tanh %179 : vector<8x128xf32>
    %cst_49 = arith.constant 5.000000e-01 : f32
    %181 = vector.broadcast %cst_49 : f32 to vector<8x128xf32>
    %182 = arith.mulf %181, %180 : vector<8x128xf32>
    %cst_50 = arith.constant 5.000000e-01 : f32
    %183 = vector.broadcast %cst_50 : f32 to vector<8x128xf32>
    %184 = arith.addf %182, %183 : vector<8x128xf32>
    %185 = vector.extract_strided_slice %184 {offsets = [0, 0], sizes = [8, 32], strides = [1, 1]} : vector<8x128xf32> to vector<8x32xf32>
    %186 = vector.extract_strided_slice %184 {offsets = [0, 32], sizes = [8, 32], strides = [1, 1]} : vector<8x128xf32> to vector<8x32xf32>
    %187 = vector.extract_strided_slice %184 {offsets = [0, 96], sizes = [8, 32], strides = [1, 1]} : vector<8x128xf32> to vector<8x32xf32>
    %188 = vector.extract_strided_slice %177 {offsets = [0, 64], sizes = [8, 32], strides = [1, 1]} : vector<8x128xf32> to vector<8x32xf32>
    %189 = math.tanh %188 : vector<8x32xf32>
    %190 = arith.mulf %186, %152 : vector<8x32xf32>
    %191 = arith.mulf %185, %189 : vector<8x32xf32>
    %192 = arith.addf %190, %191 : vector<8x32xf32>
    %193 = math.tanh %192 : vector<8x32xf32>
    %194 = arith.mulf %187, %193 : vector<8x32xf32>
    %195 = tpu.concatenate %194, %174 in 1 : vector<8x32xf32>, vector<8x32xf32> -> vector<8x64xf32>
    %cst_51 = arith.constant dense<0.000000e+00> : vector<8x128xf32>
    %196 = tpu.matmul %195, %7, %cst_51 {dimension_numbers = #tpu.dot_dimension_numbers<[1], [0], [0], [1], [0, 0, 1, 1], [], []>} : vector<8x64xf32>, vector<64x128xf32>, vector<8x128xf32> -> vector<8x128xf32>
    %197 = arith.addf %196, %10 : vector<8x128xf32>
    %cst_52 = arith.constant 5.000000e-01 : f32
    %198 = vector.broadcast %cst_52 : f32 to vector<8x128xf32>
    %199 = arith.mulf %198, %197 : vector<8x128xf32>
    %200 = math.tanh %199 : vector<8x128xf32>
    %cst_53 = arith.constant 5.000000e-01 : f32
    %201 = vector.broadcast %cst_53 : f32 to vector<8x128xf32>
    %202 = arith.mulf %201, %200 : vector<8x128xf32>
    %cst_54 = arith.constant 5.000000e-01 : f32
    %203 = vector.broadcast %cst_54 : f32 to vector<8x128xf32>
    %204 = arith.addf %202, %203 : vector<8x128xf32>
    %205 = vector.extract_strided_slice %204 {offsets = [0, 0], sizes = [8, 32], strides = [1, 1]} : vector<8x128xf32> to vector<8x32xf32>
    %206 = vector.extract_strided_slice %204 {offsets = [0, 32], sizes = [8, 32], strides = [1, 1]} : vector<8x128xf32> to vector<8x32xf32>
    %207 = vector.extract_strided_slice %204 {offsets = [0, 96], sizes = [8, 32], strides = [1, 1]} : vector<8x128xf32> to vector<8x32xf32>
    %208 = vector.extract_strided_slice %197 {offsets = [0, 64], sizes = [8, 32], strides = [1, 1]} : vector<8x128xf32> to vector<8x32xf32>
    %209 = math.tanh %208 : vector<8x32xf32>
    %210 = arith.mulf %206, %172 : vector<8x32xf32>
    %211 = arith.mulf %205, %209 : vector<8x32xf32>
    %212 = arith.addf %210, %211 : vector<8x32xf32>
    %213 = math.tanh %212 : vector<8x32xf32>
    %214 = arith.mulf %207, %213 : vector<8x32xf32>
    %215 = vector.extract_strided_slice %5 {offsets = [40, 0], sizes = [8, 128], strides = [1, 1]} : vector<64x128xf32> to vector<8x128xf32>
    %cst_55 = arith.constant dense<0.000000e+00> : vector<8x128xf32>
    %216 = tpu.matmul %194, %6, %cst_55 {dimension_numbers = #tpu.dot_dimension_numbers<[1], [0], [0], [1], [0, 0, 1, 1], [], []>} : vector<8x32xf32>, vector<32x128xf32>, vector<8x128xf32> -> vector<8x128xf32>
    %217 = arith.addf %215, %216 : vector<8x128xf32>
    %cst_56 = arith.constant 5.000000e-01 : f32
    %218 = vector.broadcast %cst_56 : f32 to vector<8x128xf32>
    %219 = arith.mulf %218, %217 : vector<8x128xf32>
    %220 = math.tanh %219 : vector<8x128xf32>
    %cst_57 = arith.constant 5.000000e-01 : f32
    %221 = vector.broadcast %cst_57 : f32 to vector<8x128xf32>
    %222 = arith.mulf %221, %220 : vector<8x128xf32>
    %cst_58 = arith.constant 5.000000e-01 : f32
    %223 = vector.broadcast %cst_58 : f32 to vector<8x128xf32>
    %224 = arith.addf %222, %223 : vector<8x128xf32>
    %225 = vector.extract_strided_slice %224 {offsets = [0, 0], sizes = [8, 32], strides = [1, 1]} : vector<8x128xf32> to vector<8x32xf32>
    %226 = vector.extract_strided_slice %224 {offsets = [0, 32], sizes = [8, 32], strides = [1, 1]} : vector<8x128xf32> to vector<8x32xf32>
    %227 = vector.extract_strided_slice %224 {offsets = [0, 96], sizes = [8, 32], strides = [1, 1]} : vector<8x128xf32> to vector<8x32xf32>
    %228 = vector.extract_strided_slice %217 {offsets = [0, 64], sizes = [8, 32], strides = [1, 1]} : vector<8x128xf32> to vector<8x32xf32>
    %229 = math.tanh %228 : vector<8x32xf32>
    %230 = arith.mulf %226, %192 : vector<8x32xf32>
    %231 = arith.mulf %225, %229 : vector<8x32xf32>
    %232 = arith.addf %230, %231 : vector<8x32xf32>
    %233 = math.tanh %232 : vector<8x32xf32>
    %234 = arith.mulf %227, %233 : vector<8x32xf32>
    %235 = tpu.concatenate %234, %214 in 1 : vector<8x32xf32>, vector<8x32xf32> -> vector<8x64xf32>
    %cst_59 = arith.constant dense<0.000000e+00> : vector<8x128xf32>
    %236 = tpu.matmul %235, %7, %cst_59 {dimension_numbers = #tpu.dot_dimension_numbers<[1], [0], [0], [1], [0, 0, 1, 1], [], []>} : vector<8x64xf32>, vector<64x128xf32>, vector<8x128xf32> -> vector<8x128xf32>
    %237 = arith.addf %236, %10 : vector<8x128xf32>
    %cst_60 = arith.constant 5.000000e-01 : f32
    %238 = vector.broadcast %cst_60 : f32 to vector<8x128xf32>
    %239 = arith.mulf %238, %237 : vector<8x128xf32>
    %240 = math.tanh %239 : vector<8x128xf32>
    %cst_61 = arith.constant 5.000000e-01 : f32
    %241 = vector.broadcast %cst_61 : f32 to vector<8x128xf32>
    %242 = arith.mulf %241, %240 : vector<8x128xf32>
    %cst_62 = arith.constant 5.000000e-01 : f32
    %243 = vector.broadcast %cst_62 : f32 to vector<8x128xf32>
    %244 = arith.addf %242, %243 : vector<8x128xf32>
    %245 = vector.extract_strided_slice %244 {offsets = [0, 0], sizes = [8, 32], strides = [1, 1]} : vector<8x128xf32> to vector<8x32xf32>
    %246 = vector.extract_strided_slice %244 {offsets = [0, 32], sizes = [8, 32], strides = [1, 1]} : vector<8x128xf32> to vector<8x32xf32>
    %247 = vector.extract_strided_slice %244 {offsets = [0, 96], sizes = [8, 32], strides = [1, 1]} : vector<8x128xf32> to vector<8x32xf32>
    %248 = vector.extract_strided_slice %237 {offsets = [0, 64], sizes = [8, 32], strides = [1, 1]} : vector<8x128xf32> to vector<8x32xf32>
    %249 = math.tanh %248 : vector<8x32xf32>
    %250 = arith.mulf %246, %212 : vector<8x32xf32>
    %251 = arith.mulf %245, %249 : vector<8x32xf32>
    %252 = arith.addf %250, %251 : vector<8x32xf32>
    %253 = math.tanh %252 : vector<8x32xf32>
    %254 = arith.mulf %247, %253 : vector<8x32xf32>
    %255 = vector.extract_strided_slice %5 {offsets = [48, 0], sizes = [8, 128], strides = [1, 1]} : vector<64x128xf32> to vector<8x128xf32>
    %cst_63 = arith.constant dense<0.000000e+00> : vector<8x128xf32>
    %256 = tpu.matmul %234, %6, %cst_63 {dimension_numbers = #tpu.dot_dimension_numbers<[1], [0], [0], [1], [0, 0, 1, 1], [], []>} : vector<8x32xf32>, vector<32x128xf32>, vector<8x128xf32> -> vector<8x128xf32>
    %257 = arith.addf %255, %256 : vector<8x128xf32>
    %cst_64 = arith.constant 5.000000e-01 : f32
    %258 = vector.broadcast %cst_64 : f32 to vector<8x128xf32>
    %259 = arith.mulf %258, %257 : vector<8x128xf32>
    %260 = math.tanh %259 : vector<8x128xf32>
    %cst_65 = arith.constant 5.000000e-01 : f32
    %261 = vector.broadcast %cst_65 : f32 to vector<8x128xf32>
    %262 = arith.mulf %261, %260 : vector<8x128xf32>
    %cst_66 = arith.constant 5.000000e-01 : f32
    %263 = vector.broadcast %cst_66 : f32 to vector<8x128xf32>
    %264 = arith.addf %262, %263 : vector<8x128xf32>
    %265 = vector.extract_strided_slice %264 {offsets = [0, 0], sizes = [8, 32], strides = [1, 1]} : vector<8x128xf32> to vector<8x32xf32>
    %266 = vector.extract_strided_slice %264 {offsets = [0, 32], sizes = [8, 32], strides = [1, 1]} : vector<8x128xf32> to vector<8x32xf32>
    %267 = vector.extract_strided_slice %264 {offsets = [0, 96], sizes = [8, 32], strides = [1, 1]} : vector<8x128xf32> to vector<8x32xf32>
    %268 = vector.extract_strided_slice %257 {offsets = [0, 64], sizes = [8, 32], strides = [1, 1]} : vector<8x128xf32> to vector<8x32xf32>
    %269 = math.tanh %268 : vector<8x32xf32>
    %270 = arith.mulf %266, %232 : vector<8x32xf32>
    %271 = arith.mulf %265, %269 : vector<8x32xf32>
    %272 = arith.addf %270, %271 : vector<8x32xf32>
    %273 = math.tanh %272 : vector<8x32xf32>
    %274 = arith.mulf %267, %273 : vector<8x32xf32>
    %275 = tpu.concatenate %274, %254 in 1 : vector<8x32xf32>, vector<8x32xf32> -> vector<8x64xf32>
    %cst_67 = arith.constant dense<0.000000e+00> : vector<8x128xf32>
    %276 = tpu.matmul %275, %7, %cst_67 {dimension_numbers = #tpu.dot_dimension_numbers<[1], [0], [0], [1], [0, 0, 1, 1], [], []>} : vector<8x64xf32>, vector<64x128xf32>, vector<8x128xf32> -> vector<8x128xf32>
    %277 = arith.addf %276, %10 : vector<8x128xf32>
    %cst_68 = arith.constant 5.000000e-01 : f32
    %278 = vector.broadcast %cst_68 : f32 to vector<8x128xf32>
    %279 = arith.mulf %278, %277 : vector<8x128xf32>
    %280 = math.tanh %279 : vector<8x128xf32>
    %cst_69 = arith.constant 5.000000e-01 : f32
    %281 = vector.broadcast %cst_69 : f32 to vector<8x128xf32>
    %282 = arith.mulf %281, %280 : vector<8x128xf32>
    %cst_70 = arith.constant 5.000000e-01 : f32
    %283 = vector.broadcast %cst_70 : f32 to vector<8x128xf32>
    %284 = arith.addf %282, %283 : vector<8x128xf32>
    %285 = vector.extract_strided_slice %284 {offsets = [0, 0], sizes = [8, 32], strides = [1, 1]} : vector<8x128xf32> to vector<8x32xf32>
    %286 = vector.extract_strided_slice %284 {offsets = [0, 32], sizes = [8, 32], strides = [1, 1]} : vector<8x128xf32> to vector<8x32xf32>
    %287 = vector.extract_strided_slice %284 {offsets = [0, 96], sizes = [8, 32], strides = [1, 1]} : vector<8x128xf32> to vector<8x32xf32>
    %288 = vector.extract_strided_slice %277 {offsets = [0, 64], sizes = [8, 32], strides = [1, 1]} : vector<8x128xf32> to vector<8x32xf32>
    %289 = math.tanh %288 : vector<8x32xf32>
    %290 = arith.mulf %286, %252 : vector<8x32xf32>
    %291 = arith.mulf %285, %289 : vector<8x32xf32>
    %292 = arith.addf %290, %291 : vector<8x32xf32>
    %293 = math.tanh %292 : vector<8x32xf32>
    %294 = arith.mulf %287, %293 : vector<8x32xf32>
    %295 = vector.extract_strided_slice %5 {offsets = [56, 0], sizes = [8, 128], strides = [1, 1]} : vector<64x128xf32> to vector<8x128xf32>
    %cst_71 = arith.constant dense<0.000000e+00> : vector<8x128xf32>
    %296 = tpu.matmul %274, %6, %cst_71 {dimension_numbers = #tpu.dot_dimension_numbers<[1], [0], [0], [1], [0, 0, 1, 1], [], []>} : vector<8x32xf32>, vector<32x128xf32>, vector<8x128xf32> -> vector<8x128xf32>
    %297 = arith.addf %295, %296 : vector<8x128xf32>
    %cst_72 = arith.constant 5.000000e-01 : f32
    %298 = vector.broadcast %cst_72 : f32 to vector<8x128xf32>
    %299 = arith.mulf %298, %297 : vector<8x128xf32>
    %300 = math.tanh %299 : vector<8x128xf32>
    %cst_73 = arith.constant 5.000000e-01 : f32
    %301 = vector.broadcast %cst_73 : f32 to vector<8x128xf32>
    %302 = arith.mulf %301, %300 : vector<8x128xf32>
    %cst_74 = arith.constant 5.000000e-01 : f32
    %303 = vector.broadcast %cst_74 : f32 to vector<8x128xf32>
    %304 = arith.addf %302, %303 : vector<8x128xf32>
    %305 = vector.extract_strided_slice %304 {offsets = [0, 0], sizes = [8, 32], strides = [1, 1]} : vector<8x128xf32> to vector<8x32xf32>
    %306 = vector.extract_strided_slice %304 {offsets = [0, 32], sizes = [8, 32], strides = [1, 1]} : vector<8x128xf32> to vector<8x32xf32>
    %307 = vector.extract_strided_slice %304 {offsets = [0, 96], sizes = [8, 32], strides = [1, 1]} : vector<8x128xf32> to vector<8x32xf32>
    %308 = vector.extract_strided_slice %297 {offsets = [0, 64], sizes = [8, 32], strides = [1, 1]} : vector<8x128xf32> to vector<8x32xf32>
    %309 = math.tanh %308 : vector<8x32xf32>
    %310 = arith.mulf %306, %272 : vector<8x32xf32>
    %311 = arith.mulf %305, %309 : vector<8x32xf32>
    %312 = arith.addf %310, %311 : vector<8x32xf32>
    %313 = math.tanh %312 : vector<8x32xf32>
    %314 = arith.mulf %307, %313 : vector<8x32xf32>
    %315 = tpu.concatenate %314, %294 in 1 : vector<8x32xf32>, vector<8x32xf32> -> vector<8x64xf32>
    %cst_75 = arith.constant dense<0.000000e+00> : vector<8x128xf32>
    %316 = tpu.matmul %315, %7, %cst_75 {dimension_numbers = #tpu.dot_dimension_numbers<[1], [0], [0], [1], [0, 0, 1, 1], [], []>} : vector<8x64xf32>, vector<64x128xf32>, vector<8x128xf32> -> vector<8x128xf32>
    %317 = arith.addf %316, %10 : vector<8x128xf32>
    %cst_76 = arith.constant 5.000000e-01 : f32
    %318 = vector.broadcast %cst_76 : f32 to vector<8x128xf32>
    %319 = arith.mulf %318, %317 : vector<8x128xf32>
    %320 = math.tanh %319 : vector<8x128xf32>
    %cst_77 = arith.constant 5.000000e-01 : f32
    %321 = vector.broadcast %cst_77 : f32 to vector<8x128xf32>
    %322 = arith.mulf %321, %320 : vector<8x128xf32>
    %cst_78 = arith.constant 5.000000e-01 : f32
    %323 = vector.broadcast %cst_78 : f32 to vector<8x128xf32>
    %324 = arith.addf %322, %323 : vector<8x128xf32>
    %325 = vector.extract_strided_slice %324 {offsets = [0, 0], sizes = [8, 32], strides = [1, 1]} : vector<8x128xf32> to vector<8x32xf32>
    %326 = vector.extract_strided_slice %324 {offsets = [0, 32], sizes = [8, 32], strides = [1, 1]} : vector<8x128xf32> to vector<8x32xf32>
    %327 = vector.extract_strided_slice %324 {offsets = [0, 96], sizes = [8, 32], strides = [1, 1]} : vector<8x128xf32> to vector<8x32xf32>
    %328 = vector.extract_strided_slice %317 {offsets = [0, 64], sizes = [8, 32], strides = [1, 1]} : vector<8x128xf32> to vector<8x32xf32>
    %329 = math.tanh %328 : vector<8x32xf32>
    %330 = arith.mulf %326, %292 : vector<8x32xf32>
    %331 = arith.mulf %325, %329 : vector<8x32xf32>
    %332 = arith.addf %330, %331 : vector<8x32xf32>
    %333 = math.tanh %332 : vector<8x32xf32>
    %334 = arith.mulf %327, %333 : vector<8x32xf32>
    %c0_79 = arith.constant 0 : index
    %c0_80 = arith.constant 0 : index
    %335 = vector.load %arg6[%c0_79, %c0_80] : memref<32x16xf32, #tpu.memory_space<vmem>>, vector<32x16xf32>
    %cst_81 = arith.constant dense<0.000000e+00> : vector<8x16xf32>
    %336 = tpu.matmul %334, %335, %cst_81 {dimension_numbers = #tpu.dot_dimension_numbers<[1], [0], [0], [1], [0, 0, 1, 1], [], []>} : vector<8x32xf32>, vector<32x16xf32>, vector<8x16xf32> -> vector<8x16xf32>
    %c0_82 = arith.constant 0 : index
    %c0_83 = arith.constant 0 : index
    %337 = vector.load %arg7[%c0_82, %c0_83] : memref<1x16xf32, #tpu.memory_space<vmem>>, vector<1x16xf32>
    %338 = vector.broadcast %337 : vector<1x16xf32> to vector<8x16xf32>
    %339 = arith.addf %336, %338 : vector<8x16xf32>
    %c0_84 = arith.constant 0 : index
    %c0_85 = arith.constant 0 : index
    %340 = vector.load %arg8[%c0_84, %c0_85] : memref<8x16xf32, #tpu.memory_space<vmem>>, vector<8x16xf32>
    tpu.vector_store %arg8[%c0_84, %c0_85], %339 {strides = array<i32>} : memref<8x16xf32, #tpu.memory_space<vmem>>, vector<8x16xf32>,
    return
  }
}

</mosaic_0001>

<bundles_post_ra>
// kernel: tpu_custom_call.1
= control target key start
LH: loop header
LB: loop body
LE: loop exit
PB: predicated region body
PF: predicated region fallthrough
CT: control target
= control target key end

     0   :  { %vm71_vm0 = vcmask 1043456   ;;  %v2587_v3 = vmov 0.0|0.0   ;;  %vm46_vm1 = vcmask 31744   ;;  %s3060_s0 = inlined_call_operand.vmem [shape: f32[64,4], index: 0, kind: input, shape index: {}]   ;;  %s3061_s1 = inlined_call_operand.vmem [shape: f32[4,128], index: 1, kind: input, shape index: {}]   ;;  %s3062_s2 = inlined_call_operand.vmem [shape: f32[32,128], index: 2, kind: input, shape index: {}]   ;;  %s3063_s3 = inlined_call_operand.vmem [shape: f32[1,128], index: 3, kind: input, shape index: {}]   ;;  %s3064_s4 = inlined_call_operand.vmem [shape: f32[64,128], index: 4, kind: input, shape index: {}]   ;;  %s3065_s5 = inlined_call_operand.vmem [shape: f32[1,128], index: 5, kind: input, shape index: {}]   ;;  %s3066_s6 = inlined_call_operand.vmem [shape: f32[32,16], index: 6, kind: input, shape index: {}]   ;;  %s3067_s7 = inlined_call_operand.vmem [shape: f32[1,16], index: 7, kind: input, shape index: {}]   ;;  %s3068_s8 = inlined_call_operand.hbm [shape: f32[8,16], index: 8, kind: output, shape index: {}]  }
   0x1   :  { %v180_v0 = vld [vmem:[%s3062_s2] sm:$0xff]  ;;  %v181_v1 = vld [vmem:[%s3062_s2 + $0x8] sm:$0xff]  ;;  %2311 = vmatprep.subr.bf16.mxu1 %v2587_v3  ;;  %v182_v7 = vld [vmem:[%s3062_s2 + $0x10] sm:$0xff] }
   0x2   :  { %v38_v2 = vld [vmem:[%s3061_s1] sm:$0xf]  ;;  %v2648_v4 = vpack.c.bf16 %v181_v1, %v180_v0  ;;  %v31_v6 = vld [vmem:[%s3060_s0 + $0x8] sm:$0xff]  ;;  %v183_v8 = vld [vmem:[%s3062_s2 + $0x18] sm:$0xff] }
   0x3   :  { %2046 = vmatprep.subr.msk.mxu0 %vm71_vm0, %v38_v2  ;;  %v30_v5 = vld [vmem:[%s3060_s0] sm:$0xff] }
   0x4   :  { %2047 = vmatpush3.msk.msra.mxu0 %vm71_vm0, %v38_v2  ;;  %2048 = vmatprep.mubr.msk.f32.mxu0 %vm46_vm1, %v30_v5 }
   0x5   :  { %13 = vsyncpa [#allocation3], 0  ;;  %2313 = vmatpush3.bf16.msra.mxu1 %v2648_v4  ;;  %2049 = vmatmul.mubr.msk.f32.vlgmr.msra.gmra.mrb[0].mxu0 %vm46_vm1, %v31_v6  ;;  %v2665_v9 = vpack.c.bf16 %v183_v8, %v182_v7  ;;  %vm2588_vm2 = vmmov 0   ;;  %v2589_v10 = vmov 0.0   ;;  %v2685_v12 = vld [vmem:[%s3063_s3] ss:$0 sm:$0xff] }
   0x6   :  { %2314 = vmatprep.subr.bf16.mxu1 %v2587_v3  ;;  %2068 = vmatprep.mubr.msk.f32.mxu1 %vm2588_vm2, %v2589_v10  ;;  %s2590_s19 = smov 64   ;;  %s2591_s3 = smov 32   ;;  %v184_v28 = vld [vmem:[%s3064_s4] sm:$0xff]  ;;  %v185_v29 = vld [vmem:[%s3064_s4 + $0x8] sm:$0xff]  ;;  %v32_v30 = vld [vmem:[%s3060_s0 + $0x10] sm:$0xff]  ;;  %vm199_vm3 = vcmask 261120  }
   0x7   :  { %2317 = vmatprep.subr.bf16.mxu0 %v2587_v3  ;;  %v2702_v31 = vpack.c.bf16 %v185_v29, %v184_v28  ;;  %2051 = vmatprep.mubr.msk.f32.mxu0 %vm46_vm1, %v32_v30  ;;  %v33_v32 = vld [vmem:[%s3060_s0 + $0x18] sm:$0xff]  ;;  %v186_v33 = vld [vmem:[%s3064_s4 + $0x10] sm:$0xff]  ;;  %v34_v35 = vld [vmem:[%s3060_s0 + $0x20] sm:$0xff]  ;;  %vm301_vm4 = vcmask 523264   ;;  %vm1876_vm5 = vcmask 130048  }
   0x8   :  { %v187_v34 = vld [vmem:[%s3064_s4 + $0x18] sm:$0xff]  ;;  %v35_v37 = vld [vmem:[%s3060_s0 + $0x28] sm:$0xff]  ;;  %v188_v38 = vld [vmem:[%s3064_s4 + $0x20] sm:$0xff] }
   0x9   :  { %2316 = vmatpush3.bf16.msra.mxu1 %v2665_v9  ;;  %2052 = vmatmul.mubr.msk.f32.gmra.mrb[2].mxu0 %vm46_vm1, %v33_v32  ;;  %v2719_v36 = vpack.c.bf16 %v187_v34, %v186_v33  ;;  %v189_v39 = vld [vmem:[%s3064_s4 + $0x28] sm:$0xff]  ;;  %v36_v40 = vld [vmem:[%s3060_s0 + $0x30] sm:$0xff]  ;;  %v37_v42 = vld [vmem:[%s3060_s0 + $0x38] sm:$0xff] }
   0xa   :  { %2329 = vmatprep.subr.bf16.mxu1 %v2587_v3  ;;  %2319 = vmatpush3.bf16.msra.mxu0 %v2702_v31  ;;  %v2737_v41 = vpack.c.bf16 %v189_v39, %v188_v38  ;;  %v190_v43 = vld [vmem:[%s3064_s4 + $0x30] sm:$0xff]  ;;  %v191_v44 = vld [vmem:[%s3064_s4 + $0x38] sm:$0xff]  ;;  %v2797_v58 = vld [vmem:[%s3065_s5] ss:$0 sm:$0xff] }
   0xb   :  { %2054 = vmatprep.mubr.msk.f32.mxu0 %vm46_vm1, %v34_v35  ;;  %2320 = vmatprep.subr.bf16.mxu0 %v2587_v3  ;;  %v2753_v46 = vpack.c.bf16 %v191_v44, %v190_v43 }
   0xc   :  { %2069 = vmatmul.mubr.f32.vlgmr.msra.gmra.mrb[0].mxu1 %v2589_v10 }
   0xd   :  { %2331 = vmatpush3.bf16.msra.mxu1 %v2648_v4  ;;  %2098 = vmatprep.mubr.msk.f32.mxu1 %vm2588_vm2, %v2589_v10 }
   0xe   :  { %2332 = vmatprep.subr.bf16.mxu1 %v2587_v3  ;;  %2055 = vmatmul.mubr.msk.f32.gmra.mrb[4].mxu0 %vm46_vm1, %v35_v37 }
   0xf   :  { %2322 = vmatpush3.bf16.msra.mxu0 %v2719_v36  ;;  %2057 = vmatprep.mubr.msk.f32.mxu0 %vm46_vm1, %v36_v40 }
  0x10   :  { %2323 = vmatprep.subr.bf16.mxu0 %v2587_v3 }
  0x11   :  { %2334 = vmatpush3.bf16.msra.mxu1 %v2665_v9 }
  0x12   :  { %2335 = vmatprep.subr.bf16.mxu1 %v2587_v3  ;;  %2058 = vmatmul.mubr.msk.f32.gmra.mrb[6].mxu0 %vm46_vm1, %v37_v42 }
  0x13   :  { %2325 = vmatpush3.bf16.msra.mxu0 %v2737_v41  ;;  %2087 = vmatprep.mubr.msk.f32.mxu0 %vm2588_vm2, %v2589_v10 }
  0x14   :  { %2326 = vmatprep.subr.bf16.mxu0 %v2587_v3 }
  0x17   :  { %2328 = vmatpush3.bf16.msra.mxu0 %v2753_v46 }
  0x18   :  { %2347 = vmatprep.subr.bf16.mxu0 %v2587_v3 }
  0xd8   :  { %v2680_v11 = vpop.f32.mrb[0].mxu0 }
  0xd9   :  { %v141_v13 = vpop.f32.mrb[1].mxu0  ;;  %v147_v57 = vadd.f32 %v2680_v11, %v2685_v12 }
  0xda   :  { %v142_v14 = vadd.f32 %v2685_v12, %v141_v13 }
  0xdc   :  { %v2761_v49 = vpop.f32.mrb[2].mxu0 }
  0xdd   :  { %v2763_v50 = vpop.f32.mrb[3].mxu0 }
  0xde   :  { %v152_v37 = vadd.f32 %v2685_v12, %v2763_v50 }
  0xdf   :  { %v269_v15 = vpop.f32.mrb[0].mxu1 }
  0xe0   :  { %v273_v16 = vadd.f32 %v269_v15, %v142_v14  ;;  %v2070_v17 = vpop.f32.mrb[1].mxu1 }
  0xe1   :  { %v2765_v51 = vpop.f32.mrb[4].mxu0 }
  0xe2   :  { %2467 = vtanh.f32 %v273_v16  ;;  %v274_v19 = vmul.f32 0.5, %v273_v16  ;;  %v2767_v52 = vpop.f32.mrb[5].mxu0 }
  0xe4   :  { %2469 = vtanh.f32 %v274_v19 }
  0xe5   :  { %v2769_v53 = vpop.f32.mrb[6].mxu0 }
  0xe6   :  { %v2771_v54 = vpop.f32.mrb[7].mxu0 }
  0xec   :  { %v2468_v18 = vpop.eup %2467 }
  0xed   :  { %281 = vrot.lane.b32.xlu0 %v2468_v18, %s2590_s19 }
  0xee   :  { %v2470_v20 = vpop.eup %2469 }
  0xef   :  { %v276_v21 = vmul.f32 0.5, %v2470_v20 }
  0xf1   :  { %v277_v22 = vadd.f32 0.5, %v276_v21 }
  0xf3   :  { %v279_v25 = vmul.f32 0.0, %v277_v22 }
 0x15f   :  { %v282_v23 = vpop.permute.xlu0 %281 }
 0x160   :  { %v284_v24 = vmul.f32 %v282_v23, %v277_v22 }
 0x162   :  { %286 = vrot.lane.b32.xlu0 %v284_v24, %s2591_s3 }
 0x1d4   :  { %v287_v26 = vpop.permute.xlu0 %286 }
 0x1d5   :  { %v2690_v27 = vadd.f32 %v287_v26, %v279_v25 }
 0x1d7   :  { %2471 = vtanh.f32 %v2690_v27 }
 0x1e1   :  { %v2472_v45 = vpop.eup %2471 }
 0x1e2   :  { %292 = vrot.lane.b32.xlu1 %v2472_v45, %s2590_s19 }
 0x254   :  { %v293_v47 = vpop.permute.xlu1 %292 }
 0x255   :  { %v295_v48 = vmul.f32 %v293_v47, %v277_v22 }
 0x257   :  { %297 = vrot.lane.b32.xlu1 %v295_v48, %s2591_s3 }
 0x2c9   :  { %v298_v55 = vpop.permute.xlu1 %297 }
 0x2ca   :  { %v300_v56 = vsel %vm199_vm3, %v298_v55, 0.0  ;;  %2099 = vmatmul.mubr.msk.f32.vlgmr.msra.gmra.mrb[2].mxu1 %vm199_vm3, %v298_v55 }
 0x2cb   :  { %2088 = vmatmul.mubr.msk.f32.vlgmr.msra.gmra.mrb[8].mxu0 %vm301_vm4, %v300_v56  ;;  %2337 = vmatpush3.bf16.msra.mxu1 %v2702_v31 }
 0x2cc   :  { %2338 = vmatprep.subr.bf16.mxu1 %v2587_v3  ;;  %2349 = vmatpush3.bf16.msra.mxu0 %v2648_v4 }
 0x2cd   :  { %2350 = vmatprep.subr.bf16.mxu0 %v2587_v3  ;;  %2128 = vmatprep.mubr.msk.f32.mxu0 %vm2588_vm2, %v2589_v10 }
 0x2ce   :  { %2117 = vmatprep.mubr.msk.f32.mxu1 %vm2588_vm2, %v2589_v10 }
 0x2cf   :  { %2340 = vmatpush3.bf16.msra.mxu1 %v2719_v36 }
 0x2d0   :  { %2341 = vmatprep.subr.bf16.mxu1 %v2587_v3  ;;  %2352 = vmatpush3.bf16.msra.mxu0 %v2665_v9 }
 0x2d1   :  { %2353 = vmatprep.subr.bf16.mxu0 %v2587_v3 }
 0x2d3   :  { %2343 = vmatpush3.bf16.msra.mxu1 %v2737_v41 }
 0x2d4   :  { %2344 = vmatprep.subr.bf16.mxu1 %v2587_v3 }
 0x2d7   :  { %2346 = vmatpush3.bf16.msra.mxu1 %v2753_v46 }
 0x2d8   :  { %2365 = vmatprep.subr.bf16.mxu1 %v2587_v3 }
 0x39d   :  { %v465_v59 = vpop.f32.mrb[2].mxu1 }
 0x39e   :  { %v469_v60 = vadd.f32 %v465_v59, %v147_v57  ;;  %v371_v61 = vpop.f32.mrb[8].mxu0  ;;  %v2100_v62 = vpop.f32.mrb[3].mxu1 }
 0x39f   :  { %v372_v63 = vadd.f32 %v2797_v58, %v371_v61  ;;  %v2089_v0 = vpop.f32.mrb[9].mxu0 }
 0x3a0   :  { %2473 = vtanh.f32 %v469_v60  ;;  %v470_v5 = vmul.f32 0.5, %v469_v60 }
 0x3a1   :  { %2475 = vtanh.f32 %v372_v63  ;;  %v375_v6 = vmul.f32 0.5, %v372_v63 }
 0x3a2   :  { %2477 = vtanh.f32 %v470_v5 }
 0x3a3   :  { %2479 = vtanh.f32 %v375_v6 }
 0x3aa   :  { %v2474_v1 = vpop.eup %2473 }
 0x3ab   :  { %v2476_v2 = vpop.eup %2475  ;;  %477 = vrot.lane.b32.xlu1 %v2474_v1, %s2590_s19 }
 0x3ac   :  { %382 = vrot.lane.b32.xlu0 %v2476_v2, %s2590_s19  ;;  %v2478_v7 = vpop.eup %2477 }
 0x3ad   :  { %v2480_v8 = vpop.eup %2479  ;;  %v472_v11 = vmul.f32 0.5, %v2478_v7 }
 0x3ae   :  { %v377_v13 = vmul.f32 0.5, %v2480_v8 }
 0x3af   :  { %v473_v14 = vadd.f32 0.5, %v472_v11 }
 0x3b0   :  { %v378_v16 = vadd.f32 0.5, %v377_v13 }
 0x3b1   :  { %v475_v20 = vmul.f32 %v473_v14, %v2690_v27 }
 0x3b2   :  { %v380_v22 = vmul.f32 0.0, %v378_v16 }
 0x41d   :  { %v478_v15 = vpop.permute.xlu1 %477 }
 0x41e   :  { %v480_v17 = vmul.f32 %v478_v15, %v473_v14  ;;  %v383_v18 = vpop.permute.xlu0 %382 }
 0x41f   :  { %v385_v19 = vmul.f32 %v383_v18, %v378_v16 }
 0x420   :  { %482 = vrot.lane.b32.xlu1 %v480_v17, %s2591_s3 }
 0x421   :  { %387 = vrot.lane.b32.xlu0 %v385_v19, %s2591_s3 }
 0x492   :  { %v483_v21 = vpop.permute.xlu1 %482 }
 0x493   :  { %v2805_v23 = vadd.f32 %v483_v21, %v475_v20  ;;  %v388_v24 = vpop.permute.xlu0 %387 }
 0x494   :  { %v2807_v25 = vadd.f32 %v388_v24, %v380_v22  ;;  %v157_v22 = vadd.f32 %v2761_v49, %v2685_v12 }
 0x495   :  { %2481 = vtanh.f32 %v2805_v23 }
 0x496   :  { %2483 = vtanh.f32 %v2807_v25 }
 0x49f   :  { %v2482_v26 = vpop.eup %2481 }
 0x4a0   :  { %v2484_v28 = vpop.eup %2483  ;;  %488 = vrot.lane.b32.xlu1 %v2482_v26, %s2590_s19 }
 0x4a1   :  { %393 = vrot.lane.b32.xlu0 %v2484_v28, %s2590_s19 }
 0x512   :  { %v489_v29 = vpop.permute.xlu1 %488 }
 0x513   :  { %v491_v30 = vmul.f32 %v489_v29, %v473_v14  ;;  %v394_v27 = vpop.permute.xlu0 %393 }
 0x514   :  { %v396_v32 = vmul.f32 %v394_v27, %v378_v16 }
 0x515   :  { %493 = vrot.lane.b32.xlu0 %v491_v30, %s2591_s3 }
 0x516   :  { %497 = vrot.lane.b32.xlu1 %v396_v32, %s2590_s19 }
 0x587   :  { %v494_v33 = vpop.permute.xlu0 %493 }
 0x588   :  { %v498_v34 = vpop.permute.xlu1 %497  ;;  %2129 = vmatmul.mubr.msk.f32.vlgmr.msra.gmra.mrb[10].mxu0 %vm199_vm3, %v494_v33 }
 0x589   :  { %v500_v35 = vsel %vm199_vm3, %v494_v33, %v498_v34  ;;  %2355 = vmatpush3.bf16.msra.mxu0 %v2702_v31  ;;  %2147 = vmatprep.mubr.msk.f32.mxu0 %vm2588_vm2, %v2589_v10 }
 0x58a   :  { %2118 = vmatmul.mubr.msk.f32.vlgmr.msra.gmra.mrb[4].mxu1 %vm301_vm4, %v500_v35  ;;  %2356 = vmatprep.subr.bf16.mxu0 %v2587_v3 }
 0x58b   :  { %2367 = vmatpush3.bf16.msra.mxu1 %v2648_v4  ;;  %2158 = vmatprep.mubr.msk.f32.mxu1 %vm2588_vm2, %v2589_v10 }
 0x58c   :  { %2368 = vmatprep.subr.bf16.mxu1 %v2587_v3 }
 0x58d   :  { %2358 = vmatpush3.bf16.msra.mxu0 %v2719_v36 }
 0x58e   :  { %2359 = vmatprep.subr.bf16.mxu0 %v2587_v3 }
 0x58f   :  { %2370 = vmatpush3.bf16.msra.mxu1 %v2665_v9 }
 0x590   :  { %2371 = vmatprep.subr.bf16.mxu1 %v2587_v3 }
 0x591   :  { %2361 = vmatpush3.bf16.msra.mxu0 %v2737_v41 }
 0x592   :  { %2362 = vmatprep.subr.bf16.mxu0 %v2587_v3 }
 0x595   :  { %2364 = vmatpush3.bf16.msra.mxu0 %v2753_v46 }
 0x596   :  { %2383 = vmatprep.subr.bf16.mxu0 %v2587_v3 }
 0x65b   :  { %v664_v38 = vpop.f32.mrb[10].mxu0 }
 0x65c   :  { %v668_v39 = vadd.f32 %v664_v38, %v152_v37  ;;  %v2130_v40 = vpop.f32.mrb[11].mxu0 }
 0x65d   :  { %v570_v42 = vpop.f32.mrb[4].mxu1 }
 0x65e   :  { %2485 = vtanh.f32 %v668_v39  ;;  %v571_v43 = vadd.f32 %v2797_v58, %v570_v42  ;;  %v2119_v44 = vpop.f32.mrb[5].mxu1  ;;  %v669_v48 = vmul.f32 0.5, %v668_v39 }
 0x660   :  { %2487 = vtanh.f32 %v571_v43  ;;  %v574_v55 = vmul.f32 0.5, %v571_v43 }
 0x661   :  { %2489 = vtanh.f32 %v669_v48 }
 0x662   :  { %2491 = vtanh.f32 %v574_v55 }
 0x668   :  { %v2486_v45 = vpop.eup %2485 }
 0x669   :  { %676 = vrot.lane.b32.xlu1 %v2486_v45, %s2590_s19 }
 0x66a   :  { %v2488_v47 = vpop.eup %2487 }
 0x66b   :  { %581 = vrot.lane.b32.xlu0 %v2488_v47, %s2590_s19  ;;  %v2490_v50 = vpop.eup %2489 }
 0x66c   :  { %v2492_v56 = vpop.eup %2491  ;;  %v671_v57 = vmul.f32 0.5, %v2490_v50 }
 0x66d   :  { %v576_v59 = vmul.f32 0.5, %v2492_v56 }
 0x66e   :  { %v672_v60 = vadd.f32 0.5, %v671_v57 }
 0x66f   :  { %v577_v63 = vadd.f32 0.5, %v576_v59 }
 0x670   :  { %v674_v2 = vmul.f32 %v672_v60, %v2805_v23 }
 0x671   :  { %v579_v7 = vmul.f32 %v577_v63, %v2807_v25 }
 0x6db   :  { %v677_v61 = vpop.permute.xlu1 %676 }
 0x6dc   :  { %v679_v62 = vmul.f32 %v677_v61, %v672_v60 }
 0x6dd   :  { %v582_v0 = vpop.permute.xlu0 %581 }
 0x6de   :  { %681 = vrot.lane.b32.xlu1 %v679_v62, %s2591_s3  ;;  %v584_v1 = vmul.f32 %v582_v0, %v577_v63 }
 0x6e0   :  { %586 = vrot.lane.b32.xlu0 %v584_v1, %s2591_s3 }
 0x750   :  { %v682_v5 = vpop.permute.xlu1 %681 }
 0x751   :  { %v2842_v6 = vadd.f32 %v682_v5, %v674_v2  ;;  %v162_v5 = vadd.f32 %v2685_v12, %v2767_v52 }
 0x752   :  { %v587_v8 = vpop.permute.xlu0 %586 }
 0x753   :  { %2493 = vtanh.f32 %v2842_v6  ;;  %v2846_v11 = vadd.f32 %v587_v8, %v579_v7 }
 0x755   :  { %2495 = vtanh.f32 %v2846_v11 }
 0x75d   :  { %v2494_v13 = vpop.eup %2493 }
 0x75e   :  { %687 = vrot.lane.b32.xlu1 %v2494_v13, %s2590_s19 }
 0x75f   :  { %v2496_v14 = vpop.eup %2495 }
 0x760   :  { %592 = vrot.lane.b32.xlu0 %v2496_v14, %s2590_s19 }
 0x7d0   :  { %v688_v15 = vpop.permute.xlu1 %687 }
 0x7d1   :  { %v690_v16 = vmul.f32 %v688_v15, %v672_v60 }
 0x7d2   :  { %v593_v17 = vpop.permute.xlu0 %592 }
 0x7d3   :  { %692 = vrot.lane.b32.xlu0 %v690_v16, %s2591_s3  ;;  %v595_v18 = vmul.f32 %v593_v17, %v577_v63 }
 0x7d5   :  { %696 = vrot.lane.b32.xlu1 %v595_v18, %s2590_s19 }
 0x845   :  { %v693_v19 = vpop.permute.xlu0 %692 }
 0x846   :  { %2159 = vmatmul.mubr.msk.f32.vlgmr.msra.gmra.mrb[6].mxu1 %vm199_vm3, %v693_v19 }
 0x847   :  { %2373 = vmatpush3.bf16.msra.mxu1 %v2702_v31  ;;  %2177 = vmatprep.mubr.msk.f32.mxu1 %vm2588_vm2, %v2589_v10  ;;  %v697_v20 = vpop.permute.xlu1 %696 }
 0x848   :  { %2374 = vmatprep.subr.bf16.mxu1 %v2587_v3  ;;  %v699_v21 = vsel %vm199_vm3, %v693_v19, %v697_v20 }
 0x849   :  { %2148 = vmatmul.mubr.msk.f32.vlgmr.msra.gmra.mrb[12].mxu0 %vm301_vm4, %v699_v21 }
 0x84a   :  { %2385 = vmatpush3.bf16.msra.mxu0 %v2648_v4  ;;  %2188 = vmatprep.mubr.msk.f32.mxu0 %vm2588_vm2, %v2589_v10 }
 0x84b   :  { %2376 = vmatpush3.bf16.msra.mxu1 %v2719_v36  ;;  %2386 = vmatprep.subr.bf16.mxu0 %v2587_v3 }
 0x84c   :  { %2377 = vmatprep.subr.bf16.mxu1 %v2587_v3 }
 0x84e   :  { %2388 = vmatpush3.bf16.msra.mxu0 %v2665_v9 }
 0x84f   :  { %2379 = vmatpush3.bf16.msra.mxu1 %v2737_v41  ;;  %2389 = vmatprep.subr.bf16.mxu0 %v2587_v3 }
 0x850   :  { %2380 = vmatprep.subr.bf16.mxu1 %v2587_v3 }
 0x853   :  { %2382 = vmatpush3.bf16.msra.mxu1 %v2753_v46 }
 0x854   :  { %2401 = vmatprep.subr.bf16.mxu1 %v2587_v3 }
 0x919   :  { %v863_v23 = vpop.f32.mrb[6].mxu1 }
 0x91a   :  { %v867_v24 = vadd.f32 %v863_v23, %v157_v22  ;;  %v2160_v25 = vpop.f32.mrb[7].mxu1 }
 0x91c   :  { %2497 = vtanh.f32 %v867_v24  ;;  %v769_v26 = vpop.f32.mrb[12].mxu0  ;;  %v868_v32 = vmul.f32 0.5, %v867_v24 }
 0x91d   :  { %v770_v28 = vadd.f32 %v2797_v58, %v769_v26  ;;  %v2149_v29 = vpop.f32.mrb[13].mxu0 }
 0x91f   :  { %2499 = vtanh.f32 %v770_v28  ;;  %v773_v33 = vmul.f32 0.5, %v770_v28 }
 0x920   :  { %2501 = vtanh.f32 %v868_v32 }
 0x921   :  { %2503 = vtanh.f32 %v773_v33 }
 0x926   :  { %v2498_v30 = vpop.eup %2497 }
 0x927   :  { %875 = vrot.lane.b32.xlu1 %v2498_v30, %s2590_s19 }
 0x929   :  { %v2500_v27 = vpop.eup %2499 }
 0x92a   :  { %780 = vrot.lane.b32.xlu0 %v2500_v27, %s2590_s19  ;;  %v2502_v49 = vpop.eup %2501 }
 0x92b   :  { %v870_v34 = vmul.f32 0.5, %v2502_v49  ;;  %v2504_v35 = vpop.eup %2503 }
 0x92c   :  { %v775_v38 = vmul.f32 0.5, %v2504_v35 }
 0x92d   :  { %v871_v37 = vadd.f32 0.5, %v870_v34 }
 0x92e   :  { %v776_v42 = vadd.f32 0.5, %v775_v38 }
 0x92f   :  { %v873_v45 = vmul.f32 %v871_v37, %v2842_v6 }
 0x930   :  { %v778_v55 = vmul.f32 %v776_v42, %v2846_v11 }
 0x999   :  { %v876_v39 = vpop.permute.xlu1 %875 }
 0x99a   :  { %v878_v40 = vmul.f32 %v876_v39, %v871_v37 }
 0x99c   :  { %880 = vrot.lane.b32.xlu1 %v878_v40, %s2591_s3  ;;  %v781_v43 = vpop.permute.xlu0 %780 }
 0x99d   :  { %v783_v44 = vmul.f32 %v781_v43, %v776_v42 }
 0x99f   :  { %785 = vrot.lane.b32.xlu0 %v783_v44, %s2591_s3 }
 0xa0e   :  { %v881_v47 = vpop.permute.xlu1 %880 }
 0xa0f   :  { %v2880_v48 = vadd.f32 %v881_v47, %v873_v45  ;;  %v167_v45 = vadd.f32 %v2765_v51, %v2685_v12 }
 0xa11   :  { %2505 = vtanh.f32 %v2880_v48  ;;  %v786_v50 = vpop.permute.xlu0 %785 }
 0xa12   :  { %v2884_v56 = vadd.f32 %v786_v50, %v778_v55 }
 0xa14   :  { %2507 = vtanh.f32 %v2884_v56 }
 0xa1b   :  { %v2506_v57 = vpop.eup %2505 }
 0xa1c   :  { %886 = vrot.lane.b32.xlu1 %v2506_v57, %s2590_s19 }
 0xa1e   :  { %v2508_v59 = vpop.eup %2507 }
 0xa1f   :  { %791 = vrot.lane.b32.xlu0 %v2508_v59, %s2590_s19 }
 0xa8e   :  { %v887_v60 = vpop.permute.xlu1 %886 }
 0xa8f   :  { %v889_v61 = vmul.f32 %v887_v60, %v871_v37 }
 0xa91   :  { %891 = vrot.lane.b32.xlu0 %v889_v61, %s2591_s3  ;;  %v792_v62 = vpop.permute.xlu0 %791 }
 0xa92   :  { %v794_v63 = vmul.f32 %v792_v62, %v776_v42 }
 0xa94   :  { %895 = vrot.lane.b32.xlu1 %v794_v63, %s2590_s19 }
 0xb03   :  { %v892_v0 = vpop.permute.xlu0 %891 }
 0xb04   :  { %2189 = vmatmul.mubr.msk.f32.vlgmr.msra.gmra.mrb[14].mxu0 %vm199_vm3, %v892_v0 }
 0xb05   :  { %2391 = vmatpush3.bf16.msra.mxu0 %v2702_v31  ;;  %2207 = vmatprep.mubr.msk.f32.mxu0 %vm2588_vm2, %v2589_v10 }
 0xb06   :  { %2392 = vmatprep.subr.bf16.mxu0 %v2587_v3  ;;  %v896_v1 = vpop.permute.xlu1 %895 }
 0xb07   :  { %v898_v2 = vsel %vm199_vm3, %v892_v0, %v896_v1 }
 0xb08   :  { %2178 = vmatmul.mubr.msk.f32.vlgmr.msra.gmra.mrb[8].mxu1 %vm301_vm4, %v898_v2 }
 0xb09   :  { %2394 = vmatpush3.bf16.msra.mxu0 %v2719_v36  ;;  %2403 = vmatpush3.bf16.msra.mxu1 %v2648_v4 }
 0xb0a   :  { %2395 = vmatprep.subr.bf16.mxu0 %v2587_v3  ;;  %2404 = vmatprep.subr.bf16.mxu1 %v2587_v3 }
 0xb0b   :  { %2218 = vmatprep.mubr.msk.f32.mxu1 %vm2588_vm2, %v2589_v10 }
 0xb0d   :  { %2397 = vmatpush3.bf16.msra.mxu0 %v2737_v41  ;;  %2406 = vmatpush3.bf16.msra.mxu1 %v2665_v9 }
 0xb0e   :  { %2398 = vmatprep.subr.bf16.mxu0 %v2587_v3  ;;  %2407 = vmatprep.subr.bf16.mxu1 %v2587_v3 }
 0xb11   :  { %2400 = vmatpush3.bf16.msra.mxu0 %v2753_v46 }
 0xb12   :  { %2419 = vmatprep.subr.bf16.mxu0 %v2587_v3 }
 0xbd7   :  { %v1062_v6 = vpop.f32.mrb[14].mxu0 }
 0xbd8   :  { %v1066_v7 = vadd.f32 %v1062_v6, %v162_v5  ;;  %v2190_v8 = vpop.f32.mrb[15].mxu0 }
 0xbda   :  { %2509 = vtanh.f32 %v1066_v7  ;;  %v1067_v17 = vmul.f32 0.5, %v1066_v7 }
 0xbdb   :  { %v968_v11 = vpop.f32.mrb[8].mxu1 }
 0xbdc   :  { %v969_v13 = vadd.f32 %v2797_v58, %v968_v11  ;;  %v2179_v14 = vpop.f32.mrb[9].mxu1 }
 0xbde   :  { %2511 = vtanh.f32 %v969_v13  ;;  %v972_v18 = vmul.f32 0.5, %v969_v13 }
 0xbdf   :  { %2513 = vtanh.f32 %v1067_v17 }
 0xbe0   :  { %2515 = vtanh.f32 %v972_v18 }
 0xbe4   :  { %v2510_v15 = vpop.eup %2509 }
 0xbe5   :  { %1074 = vrot.lane.b32.xlu1 %v2510_v15, %s2590_s19 }
 0xbe8   :  { %v2512_v16 = vpop.eup %2511 }
 0xbe9   :  { %979 = vrot.lane.b32.xlu0 %v2512_v16, %s2590_s19  ;;  %v2514_v52 = vpop.eup %2513 }
 0xbea   :  { %v1069_v19 = vmul.f32 0.5, %v2514_v52  ;;  %v2516_v20 = vpop.eup %2515 }
 0xbeb   :  { %v974_v23 = vmul.f32 0.5, %v2516_v20 }
 0xbec   :  { %v1070_v21 = vadd.f32 0.5, %v1069_v19 }
 0xbed   :  { %v975_v25 = vadd.f32 0.5, %v974_v23 }
 0xbee   :  { %v1072_v29 = vmul.f32 %v1070_v21, %v2880_v48 }
 0xbef   :  { %v977_v32 = vmul.f32 %v975_v25, %v2884_v56 }
 0xc57   :  { %v1075_v22 = vpop.permute.xlu1 %1074 }
 0xc58   :  { %v1077_v24 = vmul.f32 %v1075_v22, %v1070_v21 }
 0xc5a   :  { %1079 = vrot.lane.b32.xlu1 %v1077_v24, %s2591_s3 }
 0xc5b   :  { %v980_v26 = vpop.permute.xlu0 %979 }
 0xc5c   :  { %v982_v28 = vmul.f32 %v980_v26, %v975_v25 }
 0xc5e   :  { %984 = vrot.lane.b32.xlu0 %v982_v28, %s2591_s3 }
 0xccc   :  { %v1080_v30 = vpop.permute.xlu1 %1079 }
 0xccd   :  { %v2918_v27 = vadd.f32 %v1080_v30, %v1072_v29 }
 0xccf   :  { %2517 = vtanh.f32 %v2918_v27 }
 0xcd0   :  { %v985_v33 = vpop.permute.xlu0 %984 }
 0xcd1   :  { %v2922_v49 = vadd.f32 %v985_v33, %v977_v32 }
 0xcd3   :  { %2519 = vtanh.f32 %v2922_v49 }
 0xcd9   :  { %v2518_v34 = vpop.eup %2517 }
 0xcda   :  { %1085 = vrot.lane.b32.xlu1 %v2518_v34, %s2590_s19 }
 0xcdd   :  { %v2520_v35 = vpop.eup %2519 }
 0xcde   :  { %990 = vrot.lane.b32.xlu0 %v2520_v35, %s2590_s19 }
 0xd4c   :  { %v1086_v37 = vpop.permute.xlu1 %1085 }
 0xd4d   :  { %v1088_v38 = vmul.f32 %v1086_v37, %v1070_v21 }
 0xd4f   :  { %1090 = vrot.lane.b32.xlu0 %v1088_v38, %s2591_s3 }
 0xd50   :  { %v991_v39 = vpop.permute.xlu0 %990 }
 0xd51   :  { %v993_v40 = vmul.f32 %v991_v39, %v975_v25 }
 0xd53   :  { %1094 = vrot.lane.b32.xlu1 %v993_v40, %s2590_s19 }
 0xdc1   :  { %v1091_v42 = vpop.permute.xlu0 %1090 }
 0xdc2   :  { %2219 = vmatmul.mubr.msk.f32.vlgmr.msra.gmra.mrb[10].mxu1 %vm199_vm3, %v1091_v42 }
 0xdc3   :  { %2409 = vmatpush3.bf16.msra.mxu1 %v2702_v31  ;;  %2237 = vmatprep.mubr.msk.f32.mxu1 %vm2588_vm2, %v2589_v10 }
 0xdc4   :  { %2410 = vmatprep.subr.bf16.mxu1 %v2587_v3 }
 0xdc5   :  { %v1095_v43 = vpop.permute.xlu1 %1094 }
 0xdc6   :  { %v1097_v44 = vsel %vm199_vm3, %v1091_v42, %v1095_v43 }
 0xdc7   :  { %2412 = vmatpush3.bf16.msra.mxu1 %v2719_v36  ;;  %2208 = vmatmul.mubr.msk.f32.vlgmr.msra.gmra.mrb[16].mxu0 %vm301_vm4, %v1097_v44 }
 0xdc8   :  { %2413 = vmatprep.subr.bf16.mxu1 %v2587_v3  ;;  %2421 = vmatpush3.bf16.msra.mxu0 %v2648_v4 }
 0xdc9   :  { %2248 = vmatprep.mubr.msk.f32.mxu0 %vm2588_vm2, %v2589_v10  ;;  %2422 = vmatprep.subr.bf16.mxu0 %v2587_v3 }
 0xdcb   :  { %2415 = vmatpush3.bf16.msra.mxu1 %v2737_v41 }
 0xdcc   :  { %2416 = vmatprep.subr.bf16.mxu1 %v2587_v3  ;;  %2424 = vmatpush3.bf16.msra.mxu0 %v2665_v9 }
 0xdcd   :  { %2425 = vmatprep.subr.bf16.mxu0 %v2587_v3 }
 0xdcf   :  { %2418 = vmatpush3.bf16.msra.mxu1 %v2753_v46 }
 0xdd0   :  { %2437 = vmatprep.subr.bf16.mxu1 %v2587_v3 }
 0xe95   :  { %v1261_v47 = vpop.f32.mrb[10].mxu1 }
 0xe96   :  { %v1265_v48 = vadd.f32 %v1261_v47, %v167_v45  ;;  %v2220_v55 = vpop.f32.mrb[11].mxu1 }
 0xe98   :  { %2521 = vtanh.f32 %v1265_v48  ;;  %v1266_v61 = vmul.f32 0.5, %v1265_v48 }
 0xe9a   :  { %v1167_v50 = vpop.f32.mrb[16].mxu0 }
 0xe9b   :  { %v1168_v56 = vadd.f32 %v2797_v58, %v1167_v50  ;;  %v2209_v57 = vpop.f32.mrb[17].mxu0 }
 0xe9d   :  { %2523 = vtanh.f32 %v1168_v56  ;;  %v1171_v62 = vmul.f32 0.5, %v1168_v56 }
 0xe9e   :  { %2525 = vtanh.f32 %v1266_v61 }
 0xe9f   :  { %2527 = vtanh.f32 %v1171_v62 }
 0xea2   :  { %v2522_v59 = vpop.eup %2521 }
 0xea3   :  { %1273 = vrot.lane.b32.xlu1 %v2522_v59, %s2590_s19 }
 0xea7   :  { %v2524_v60 = vpop.eup %2523 }
 0xea8   :  { %1178 = vrot.lane.b32.xlu0 %v2524_v60, %s2590_s19  ;;  %v2526_v51 = vpop.eup %2525 }
 0xea9   :  { %v1268_v63 = vmul.f32 0.5, %v2526_v51  ;;  %v2528_v0 = vpop.eup %2527 }
 0xeaa   :  { %v1173_v6 = vmul.f32 0.5, %v2528_v0 }
 0xeab   :  { %v1269_v1 = vadd.f32 0.5, %v1268_v63 }
 0xeac   :  { %v1174_v7 = vadd.f32 0.5, %v1173_v6 }
 0xead   :  { %v1271_v13 = vmul.f32 %v1269_v1, %v2918_v27 }
 0xeae   :  { %v1176_v16 = vmul.f32 %v1174_v7, %v2922_v49 }
 0xf15   :  { %v1274_v2 = vpop.permute.xlu1 %1273 }
 0xf16   :  { %v1276_v5 = vmul.f32 %v1274_v2, %v1269_v1 }
 0xf18   :  { %1278 = vrot.lane.b32.xlu1 %v1276_v5, %s2591_s3 }
 0xf1a   :  { %v1179_v8 = vpop.permute.xlu0 %1178 }
 0xf1b   :  { %v1181_v11 = vmul.f32 %v1179_v8, %v1174_v7 }
 0xf1d   :  { %1183 = vrot.lane.b32.xlu0 %v1181_v11, %s2591_s3 }
 0xf8a   :  { %v1279_v14 = vpop.permute.xlu1 %1278 }
 0xf8b   :  { %v2956_v15 = vadd.f32 %v1279_v14, %v1271_v13 }
 0xf8d   :  { %2529 = vtanh.f32 %v2956_v15 }
 0xf8f   :  { %v1184_v17 = vpop.permute.xlu0 %1183 }
 0xf90   :  { %v2960_v18 = vadd.f32 %v1184_v17, %v1176_v16 }
 0xf92   :  { %2531 = vtanh.f32 %v2960_v18 }
 0xf97   :  { %v2530_v52 = vpop.eup %2529 }
 0xf98   :  { %1284 = vrot.lane.b32.xlu1 %v2530_v52, %s2590_s19 }
 0xf9c   :  { %v2532_v19 = vpop.eup %2531 }
 0xf9d   :  { %1189 = vrot.lane.b32.xlu0 %v2532_v19, %s2590_s19 }
0x100a   :  { %v1285_v20 = vpop.permute.xlu1 %1284 }
0x100b   :  { %v1287_v21 = vmul.f32 %v1285_v20, %v1269_v1 }
0x100d   :  { %1289 = vrot.lane.b32.xlu0 %v1287_v21, %s2591_s3 }
0x100f   :  { %v1190_v22 = vpop.permute.xlu0 %1189 }
0x1010   :  { %v1192_v23 = vmul.f32 %v1190_v22, %v1174_v7 }
0x1012   :  { %1293 = vrot.lane.b32.xlu1 %v1192_v23, %s2590_s19 }
0x107f   :  { %v1290_v24 = vpop.permute.xlu0 %1289 }
0x1080   :  { %2249 = vmatmul.mubr.msk.f32.vlgmr.msra.gmra.mrb[18].mxu0 %vm199_vm3, %v1290_v24 }
0x1081   :  { %2427 = vmatpush3.bf16.msra.mxu0 %v2702_v31  ;;  %2267 = vmatprep.mubr.msk.f32.mxu0 %vm2588_vm2, %v2589_v10 }
0x1082   :  { %2428 = vmatprep.subr.bf16.mxu0 %v2587_v3 }
0x1084   :  { %v1294_v25 = vpop.permute.xlu1 %1293 }
0x1085   :  { %2430 = vmatpush3.bf16.msra.mxu0 %v2719_v36  ;;  %v1296_v26 = vsel %vm199_vm3, %v1290_v24, %v1294_v25 }
0x1086   :  { %2431 = vmatprep.subr.bf16.mxu0 %v2587_v3  ;;  %2238 = vmatmul.mubr.msk.f32.vlgmr.msra.gmra.mrb[12].mxu1 %vm301_vm4, %v1296_v26 }
0x1087   :  { %2439 = vmatpush3.bf16.msra.mxu1 %v2648_v4  ;;  %2278 = vmatprep.mubr.msk.f32.mxu1 %vm2588_vm2, %v2589_v10  ;;  %v172_v4 = vadd.f32 %v2685_v12, %v2771_v54 }
0x1088   :  { %2440 = vmatprep.subr.bf16.mxu1 %v2587_v3 }
0x1089   :  { %2433 = vmatpush3.bf16.msra.mxu0 %v2737_v41 }
0x108a   :  { %2434 = vmatprep.subr.bf16.mxu0 %v2587_v3 }
0x108b   :  { %2442 = vmatpush3.bf16.msra.mxu1 %v2665_v9 }
0x108c   :  { %2443 = vmatprep.subr.bf16.mxu1 %v2587_v3 }
0x108d   :  { %2436 = vmatpush3.bf16.msra.mxu0 %v2753_v46 }
0x108e   :  { %2455 = vmatprep.subr.bf16.mxu0 %v2587_v3 }
0x1153   :  { %v1460_v28 = vpop.f32.mrb[18].mxu0 }
0x1154   :  { %v1464_v29 = vadd.f32 %v1460_v28, %v172_v4  ;;  %v2250_v30 = vpop.f32.mrb[19].mxu0 }
0x1156   :  { %2533 = vtanh.f32 %v1464_v29  ;;  %v1465_v34 = vmul.f32 0.5, %v1464_v29 }
0x1159   :  { %v1366_v27 = vpop.f32.mrb[12].mxu1 }
0x115a   :  { %v1367_v32 = vadd.f32 %v2797_v58, %v1366_v27  ;;  %v2239_v33 = vpop.f32.mrb[13].mxu1 }
0x115c   :  { %2535 = vtanh.f32 %v1367_v32  ;;  %v1370_v35 = vmul.f32 0.5, %v1367_v32 }
0x115d   :  { %2537 = vtanh.f32 %v1465_v34 }
0x115e   :  { %2539 = vtanh.f32 %v1370_v35 }
0x1160   :  { %v2534_v49 = vpop.eup %2533 }
0x1161   :  { %1472 = vrot.lane.b32.xlu1 %v2534_v49, %s2590_s19 }
0x1166   :  { %v2536_v9 = vpop.eup %2535 }
0x1167   :  { %1377 = vrot.lane.b32.xlu0 %v2536_v9, %s2590_s19  ;;  %v2538_v54 = vpop.eup %2537 }
0x1168   :  { %v1467_v37 = vmul.f32 0.5, %v2538_v54  ;;  %v2540_v38 = vpop.eup %2539 }
0x1169   :  { %v1372_v43 = vmul.f32 0.5, %v2540_v38 }
0x116a   :  { %v1468_v39 = vadd.f32 0.5, %v1467_v37 }
0x116b   :  { %v1373_v44 = vadd.f32 0.5, %v1372_v43 }
0x116c   :  { %v1470_v48 = vmul.f32 %v1468_v39, %v2956_v15 }
0x116d   :  { %v1375_v56 = vmul.f32 %v1373_v44, %v2960_v18 }
0x11d3   :  { %v1473_v40 = vpop.permute.xlu1 %1472 }
0x11d4   :  { %v1475_v42 = vmul.f32 %v1473_v40, %v1468_v39 }
0x11d6   :  { %1477 = vrot.lane.b32.xlu1 %v1475_v42, %s2591_s3 }
0x11d9   :  { %v1378_v45 = vpop.permute.xlu0 %1377 }
0x11da   :  { %v1380_v47 = vmul.f32 %v1378_v45, %v1373_v44 }
0x11dc   :  { %1382 = vrot.lane.b32.xlu0 %v1380_v47, %s2591_s3 }
0x1248   :  { %v1478_v55 = vpop.permute.xlu1 %1477 }
0x1249   :  { %v1480_v50 = vadd.f32 %v1478_v55, %v1470_v48 }
0x124b   :  { %2541 = vtanh.f32 %v1480_v50 }
0x124e   :  { %v1383_v57 = vpop.permute.xlu0 %1382 }
0x124f   :  { %v1385_v59 = vadd.f32 %v1383_v57, %v1375_v56  ;;  %v1792_v56 = vld [vmem:[%s3066_s6 + $0x10] sm:$0xff] }
0x1251   :  { %2543 = vtanh.f32 %v1385_v59 }
0x1255   :  { %v2542_v60 = vpop.eup %2541 }
0x1256   :  { %1483 = vrot.lane.b32.xlu1 %v2542_v60, %s2590_s19 }
0x125b   :  { %v2544_v61 = vpop.eup %2543 }
0x125c   :  { %1388 = vrot.lane.b32.xlu0 %v2544_v61, %s2590_s19 }
0x12c8   :  { %v1484_v62 = vpop.permute.xlu1 %1483 }
0x12c9   :  { %v1486_v51 = vmul.f32 %v1484_v62, %v1468_v39 }
0x12cb   :  { %1488 = vrot.lane.b32.xlu0 %v1486_v51, %s2591_s3 }
0x12ce   :  { %v1389_v63 = vpop.permute.xlu0 %1388 }
0x12cf   :  { %v1391_v0 = vmul.f32 %v1389_v63, %v1373_v44 }
0x12d1   :  { %1492 = vrot.lane.b32.xlu1 %v1391_v0, %s2590_s19  ;;  %v1918_v0 = vld [vmem:[%s3067_s7] ss:$0 sm:$0xff] }
0x133d   :  { %v1489_v1 = vpop.permute.xlu0 %1488 }
0x133e   :  { %2279 = vmatmul.mubr.msk.f32.vlgmr.msra.gmra.mrb[14].mxu1 %vm199_vm3, %v1489_v1 }
0x133f   :  { %2445 = vmatpush3.bf16.msra.mxu1 %v2702_v31  ;;  %2297 = vmatprep.mubr.msk.f32.mxu1 %vm2588_vm2, %v2589_v10  ;;  %v177_v31 = vadd.f32 %v2769_v53, %v2685_v12 }
0x1340   :  { %2446 = vmatprep.subr.bf16.mxu1 %v2587_v3 }
0x1343   :  { %2448 = vmatpush3.bf16.msra.mxu1 %v2719_v36  ;;  %v1493_v2 = vpop.permute.xlu1 %1492 }
0x1344   :  { %2449 = vmatprep.subr.bf16.mxu1 %v2587_v3  ;;  %v1495_v5 = vsel %vm199_vm3, %v1489_v1, %v1493_v2 }
0x1345   :  { %2268 = vmatmul.mubr.msk.f32.vlgmr.msra.gmra.mrb[20].mxu0 %vm301_vm4, %v1495_v5 }
0x1346   :  { %2308 = vmatprep.mubr.msk.f32.mxu0 %vm2588_vm2, %v2589_v10 }
0x1347   :  { %2451 = vmatpush3.bf16.msra.mxu1 %v2737_v41 }
0x1348   :  { %2452 = vmatprep.subr.bf16.mxu1 %v2587_v3 }
0x134b   :  { %2454 = vmatpush3.bf16.msra.mxu1 %v2753_v46 }
0x1411   :  { %v1659_v36 = vpop.f32.mrb[14].mxu1 }
0x1412   :  { %v1663_v6 = vadd.f32 %v1659_v36, %v177_v31  ;;  %v2280_v7 = vpop.f32.mrb[15].mxu1 }
0x1414   :  { %2545 = vtanh.f32 %v1663_v6  ;;  %v1664_v14 = vmul.f32 0.5, %v1663_v6 }
0x1418   :  { %v1565_v8 = vpop.f32.mrb[20].mxu0 }
0x1419   :  { %v1566_v11 = vadd.f32 %v2797_v58, %v1565_v8  ;;  %v2269_v13 = vpop.f32.mrb[21].mxu0 }
0x141b   :  { %2547 = vtanh.f32 %v1566_v11  ;;  %v1569_v46 = vmul.f32 0.5, %v1566_v11 }
0x141c   :  { %2549 = vtanh.f32 %v1664_v14 }
0x141d   :  { %2551 = vtanh.f32 %v1569_v46 }
0x141e   :  { %v2546_v41 = vpop.eup %2545 }
0x141f   :  { %1671 = vrot.lane.b32.xlu1 %v2546_v41, %s2590_s19 }
0x1425   :  { %v2548_v10 = vpop.eup %2547 }
0x1426   :  { %1576 = vrot.lane.b32.xlu0 %v2548_v10, %s2590_s19  ;;  %v2550_v12 = vpop.eup %2549 }
0x1427   :  { %v1666_v53 = vmul.f32 0.5, %v2550_v12  ;;  %v2552_v16 = vpop.eup %2551 }
0x1428   :  { %v1571_v52 = vmul.f32 0.5, %v2552_v16 }
0x1429   :  { %v1667_v15 = vadd.f32 0.5, %v1666_v53 }
0x142a   :  { %v1572_v19 = vadd.f32 0.5, %v1571_v52 }
0x142b   :  { %v1669_v22 = vmul.f32 %v1667_v15, %v1480_v50  ;;  %v1791_v50 = vld [vmem:[%s3066_s6 + $0x8] sm:$0xff] }
0x142c   :  { %v1574_v25 = vmul.f32 %v1572_v19, %v1385_v59  ;;  %v1793_v59 = vld [vmem:[%s3066_s6 + $0x18] sm:$0xff] }
0x142d   :  { %v2459_v60 = vpack.c.bf16 %v1793_v59, %v1792_v56 }
0x1491   :  { %v1672_v17 = vpop.permute.xlu1 %1671 }
0x1492   :  { %v1674_v18 = vmul.f32 %v1672_v17, %v1667_v15 }
0x1494   :  { %1676 = vrot.lane.b32.xlu1 %v1674_v18, %s2591_s3 }
0x1498   :  { %v1577_v20 = vpop.permute.xlu0 %1576 }
0x1499   :  { %v1579_v21 = vmul.f32 %v1577_v20, %v1572_v19 }
0x149b   :  { %1581 = vrot.lane.b32.xlu0 %v1579_v21, %s2591_s3 }
0x1506   :  { %v1677_v23 = vpop.permute.xlu1 %1676 }
0x1507   :  { %v1679_v24 = vadd.f32 %v1677_v23, %v1669_v22 }
0x1509   :  { %2553 = vtanh.f32 %v1679_v24 }
0x150d   :  { %v1582_v26 = vpop.permute.xlu0 %1581 }
0x150e   :  { %v1584_v4 = vadd.f32 %v1582_v26, %v1574_v25 }
0x1510   :  { %2555 = vtanh.f32 %v1584_v4 }
0x1513   :  { %v2554_v28 = vpop.eup %2553 }
0x1514   :  { %1682 = vrot.lane.b32.xlu1 %v2554_v28, %s2590_s19 }
0x151a   :  { %v2556_v29 = vpop.eup %2555 }
0x151b   :  { %1587 = vrot.lane.b32.xlu0 %v2556_v29, %s2590_s19 }
0x1586   :  { %v1683_v30 = vpop.permute.xlu1 %1682 }
0x1587   :  { %v1685_v27 = vmul.f32 %v1683_v30, %v1667_v15 }
0x1589   :  { %1687 = vrot.lane.b32.xlu0 %v1685_v27, %s2591_s3 }
0x158d   :  { %v1588_v32 = vpop.permute.xlu0 %1587 }
0x158e   :  { %v1590_v33 = vmul.f32 %v1588_v32, %v1572_v19 }
0x1590   :  { %1691 = vrot.lane.b32.xlu1 %v1590_v33, %s2590_s19 }
0x15fb   :  { %v1688_v49 = vpop.permute.xlu0 %1687 }
0x1602   :  { %v1692_v9 = vpop.permute.xlu1 %1691 }
0x1603   :  { %v1694_v34 = vsel %vm199_vm3, %v1688_v49, %v1692_v9 }
0x1604   :  { %2298 = vmatmul.mubr.msk.f32.vlgmr.msra.gmra.mrb[16].mxu1 %vm301_vm4, %v1694_v34 }
0x16d7   :  { %v1764_v35 = vpop.f32.mrb[16].mxu1 }
0x16d8   :  { %v1765_v54 = vadd.f32 %v2797_v58, %v1764_v35  ;;  %v2299_v37 = vpop.f32.mrb[17].mxu1  ;;  %v1790_v58 = vld [vmem:[%s3066_s6] sm:$0xff]  ;;  %s2592_s6 = smov [#allocation2]  }
0x16d9   :  { %v2456_v57 = vpack.c.bf16 %v1791_v50, %v1790_v58  ;;  %s1884_s12 = sshll.u32 %s2592_s6, 4  ;;  %s1885_s12 = int_to_ptr.vmem [resolvable:$true] %s1884_s12 }
0x16da   :  { %2557 = vtanh.f32 %v1765_v54  ;;  %v1768_v39 = vmul.f32 0.5, %v1765_v54  ;;  %p2568_p1 = scmp.lt.s32.totalorder %s1885_s12, %s1885_s12 }
0x16db   :  { %2457 = vmatpush3.bf16.msra.mxu0 %v2456_v57 }
0x16dc   :  { %2559 = vtanh.f32 %v1768_v39  ;;  %2458 = vmatprep.subr.bf16.mxu0 %v2587_v3 }
0x16df   :  { %2460 = vmatpush3.bf16.msra.mxu0 %v2459_v60 }
0x16e4   :  { %v2558_v38 = vpop.eup %2557 }
0x16e5   :  { %1775 = vrot.lane.b32.xlu0 %v2558_v38, %s2590_s19 }
0x16e6   :  { %v2560_v40 = vpop.eup %2559 }
0x16e7   :  { %v1770_v42 = vmul.f32 0.5, %v2560_v40 }
0x16e9   :  { %v1771_v43 = vadd.f32 0.5, %v1770_v42 }
0x16eb   :  { %v1773_v47 = vmul.f32 %v1771_v43, %v1584_v4 }
0x1757   :  { %v1776_v44 = vpop.permute.xlu0 %1775 }
0x1758   :  { %v1778_v45 = vmul.f32 %v1776_v44, %v1771_v43 }
0x175a   :  { %1780 = vrot.lane.b32.xlu1 %v1778_v45, %s2591_s3 }
0x17cc   :  { %v1781_v48 = vpop.permute.xlu1 %1780 }
0x17cd   :  { %v1783_v55 = vadd.f32 %v1781_v48, %v1773_v47 }
0x17cf   :  { %2561 = vtanh.f32 %v1783_v55 }
0x17d9   :  { %v2562_v61 = vpop.eup %2561 }
0x17da   :  { %1786 = vrot.lane.b32.xlu0 %v2562_v61, %s2590_s19  ;;  %s2563_s19 = scalar_lea.vmem %s1885_s12, 128 }
0x17db   :  { %p2564_p0 = scmp.ne.s32.totalorder %s1885_s12, %s2563_s19  ;;  %p2569_p2 = scmp.lt.s32.totalorder %s2563_s19, %s2563_s19 }
0x17dd   :  { %p2570_p3 = por %p2569_p2, %p2568_p1 }
0x17df   :  { %p2571_p4 = pnand %p2570_p3, %p2564_p0 }
0x184c   :  { %v1787_v62 = vpop.permute.xlu0 %1786 }
0x184d   :  { %v1789_v51 = vmul.f32 %v1787_v62, %v1771_v43 }
0x184f   :  { %1802 = vrot.lane.b32.xlu1 %v1789_v51, %s2591_s3 }
0x18c1   :  { %v1803_v63 = vpop.permute.xlu1 %1802 }
0x18c2   :  { %2309 = vmatmul.mubr.msk.f32.vlgmr.msra.gmra.mrb[22].mxu0 %vm199_vm3, %v1803_v63 }
0x1995   :  { %v1872_v1 = vpop.f32.mrb[22].mxu0 }
0x1996   :  { %v1873_v3 = vadd.f32 %v1918_v0, %v1872_v1  ;;  %v2310_v2 = vpop.f32.mrb[23].mxu0 }
0x1998   :  { %1877 = vst.msk [vmem:[#allocation2] sm:$0xff] %vm1876_vm5, %v1873_v3 }
0x1999   :  { %2574 = shalt.err (!%p2571_p4)
}
0x199a   :  { %s2575_s14 = scalar_lea.hbm %s3068_s8, 128 }
0x199b   :  { %p2576_p5 = scmp.ne.s32.totalorder %s3068_s8, %s2575_s14  ;;  %p2579_p6 = scmp.lt.u32.totalorder %s2575_s14, %s3068_s8 }
0x199d   :  { %p2581_p7 = pnand %p2579_p6, %p2576_p5 }
0x199f   :  { %2584 = shalt.err (!%p2581_p7)
}
0x19a0   :  { %1887 = dma.vmem_to_hbm [thread:$0]  %s1885_s12, 128, %s3068_s8, [#allocation3]  }
0x19a1   :  { %2585 = dma.done.wait [#allocation3], 128  }
0x19a2   :  { %2586 = vsyncadd [#allocation3], 4294967168 }
0x19a3   :  { %1891 = vsyncpa [#allocation3], 1 }

</bundles_post_ra>
